<compile_context>
chip_gen: v7x
topology: tpu7x:2x2x1
jax: 0.10.0
libtpu: 0.0.40
codegen_flags: <defaults>
</compile_context>

<pallas_src>
from functools import partial

import jax
import jax.numpy as jnp
import numpy as np
from jax.experimental import pallas as pl
from jax.experimental.pallas import tpu as pltpu


def _linear_attention_kernel(x_ref, wqkv_ref, wout_ref, bout_ref, mask_ref, o_ref,
                             *, heads, dim_head):
    """One grid step = one batch element (channel-major tiles).

    x_ref   : (1, C, N) f32           input (channels x tokens)
    wqkv_ref: (3*hidden, C) f32       qkv projection (1x1 conv, no bias)
    wout_ref: (C, hidden) bf16        output projection (1x1 conv)
    bout_ref: (C, 1) f32              output projection bias
    mask_ref: (hidden, hidden) f32    block-diagonal head mask (precomputed)
    o_ref   : (1, C, N) f32           output
    """
    hidden = heads * dim_head
    C = x_ref.shape[1]

    x = x_ref[0]                                   # (C, N) f32
    w = wqkv_ref[...]                              # (3*hidden, C) f32

    # --- qkv 1x1 conv as an unrolled VPU outer-product accumulation (f32). ---
    # Avoids feeding the MXU a K=4 contraction (padded to 128/256 -> mostly idle)
    # and keeps the softmax logits in full f32 precision.
    qkv = w[:, 0:1] * x[0:1, :]                    # (3*hidden, N)
    for c in range(1, C):                          # C is static -> unrolled at trace time
        qkv = qkv + w[:, c:c + 1] * x[c:c + 1, :]

    # Conv channel order from 'b (qkv heads c) h w': qkv-major, then heads, then dim_head.
    q = qkv[0 * hidden:1 * hidden]                 # (hidden, N)
    k = qkv[1 * hidden:2 * hidden]
    v = qkv[2 * hidden:3 * hidden]

    # --- softmax over tokens, kept UN-normALIZED (exp <= 1); normalize ctx instead. ---
    k_max = jnp.max(k, axis=1, keepdims=True)      # (hidden, 1) f32
    k_exp = jnp.exp(k - k_max)                     # (hidden, N) f32
    denom = jnp.sum(k_exp, axis=1, keepdims=True)  # (hidden, 1) f32
    inv_denom = pl.reciprocal(denom, approx=False)  # tiny now -> exact costs nothing

    # --- fused-heads context on the MXU: ctx[i, j] = sum_n k_exp[i, n] * v[j, n]. ---
    ctx = jax.lax.dot_general(
        k_exp.astype(jnp.bfloat16), v.astype(jnp.bfloat16),
        (((1,), (1,)), ((), ())),
        preferred_element_type=jnp.float32)        # (hidden, hidden) f32

    # Row-scale by 1/denom (== softmax normalization) and zero cross-head terms.
    ctx = ctx * inv_denom * mask_ref[...]

    # --- reassociated output projection: y = (wout @ masked_ctx^T) @ q + bias. ---
    # w_ctx[c, i] = sum_j wout[c, j] * ctx[i, j]    (tiny (C, hidden) product)
    w_ctx = jax.lax.dot_general(
        wout_ref[...], ctx.astype(jnp.bfloat16),
        (((1,), (1,)), ((), ())),
        preferred_element_type=jnp.float32)        # (C, hidden) f32

    y = jnp.dot(w_ctx.astype(jnp.bfloat16), q.astype(jnp.bfloat16),
                preferred_element_type=jnp.float32)  # (C, N) f32
    o_ref[0] = (y + bout_ref[...]).astype(o_ref.dtype)  # lane-dense store


def linear_attention_pallas(x_nchw, w_qkv, w_out, b_out, *, heads, dim_head):
    """x_nchw: (B, C, H, W); w_qkv: (3*hidden, C, 1, 1); w_out: (C, hidden, 1, 1)."""
    B, C, H, W = x_nchw.shape
    N = H * W
    hidden = heads * dim_head

    # Channel-major tokens: (B, C, N) — a pure reshape, no transpose on either side.
    x_tok = x_nchw.reshape(B, C, N)

    # 1x1 conv weights -> matmul matrices. qkv weights stay f32 (VPU path);
    # output-projection weights are bf16 MXU operands (f32 accumulation in-kernel).
    wqkv_mat = w_qkv[:, :, 0, 0].astype(jnp.float32)   # (3*hidden, C)
    wout_mat = w_out[:, :, 0, 0].astype(jnp.bfloat16)  # (C, hidden)
    bout_mat = b_out.reshape(C, 1).astype(jnp.float32)  # (C, 1)

    # Precomputed block-diagonal head mask (DMA'd once via constant index_map).
    hid_ids = jnp.arange(hidden) // dim_head
    head_mask = (hid_ids[:, None] == hid_ids[None, :]).astype(jnp.float32)

    kern = partial(_linear_attention_kernel, heads=heads, dim_head=dim_head)

    # Per-shape scoped-VMEM sizing (v5e default is only 16 MiB of 128 MiB physical):
    # f32 qkv/k_exp, bf16 matmul copies, double-buffered x/o blocks + fixed headroom.
    bytes_per_token = (3 * hidden + hidden + 2 * C) * 4   # qkv, k_exp, x, y (f32)
    bytes_per_token += 3 * hidden * 2                      # bf16 k_exp / v / q copies
    bytes_per_token += 2 * 2 * C * 4                       # double-buffered x/o blocks
    vmem_needed = bytes_per_token * N + (4 << 20)
    vmem_limit = int(min(60 << 20, max(16 << 20, vmem_needed)))

    # TODO(synk): for very large N (H*W >= ~2048-4096), especially on v7x (64 MiB VMEM,
    # 2 TensorCores), split into a two-pass pipeline: pass 1 accumulates ctx over N-tiles
    # with an online softmax (running max + rescale), pass 2 emits y per (batch, N-tile)
    # with both grid axes "parallel".
    out_tok = pl.pallas_call(
        kern,
        out_shape=jax.ShapeDtypeStruct((B, C, N), x_tok.dtype),
        grid_spec=pltpu.PrefetchScalarGridSpec(
            num_scalar_prefetch=0,
            grid=(B,),
            in_specs=[
                pl.BlockSpec((1, C, N), lambda b: (b, 0, 0)),
                pl.BlockSpec((3 * hidden, C), lambda b: (0, 0)),
                pl.BlockSpec((C, hidden), lambda b: (0, 0)),
                pl.BlockSpec((C, 1), lambda b: (0, 0)),
                pl.BlockSpec((hidden, hidden), lambda b: (0, 0)),
            ],
            out_specs=pl.BlockSpec((1, C, N), lambda b: (b, 0, 0)),
        ),
        compiler_params=pltpu.CompilerParams(
            dimension_semantics=("parallel",),
            vmem_limit_bytes=vmem_limit),
    )(x_tok, wqkv_mat, wout_mat, bout_mat, head_mask)

    return out_tok.reshape(B, C, H, W)


def linear_attention_ref(x, w_qkv, w_out, b_out, *, heads, dim_head):
    """Pure-JAX f32 reference mirroring the PyTorch forward (for verification)."""
    B, C, H, W = x.shape
    qkv = jnp.einsum('bchw,oc->bohw', x, w_qkv[:, :, 0, 0])
    qkv = qkv.reshape(B, 3, heads, dim_head, H * W)
    q, k, v = qkv[:, 0], qkv[:, 1], qkv[:, 2]
    k = jax.nn.softmax(k, axis=-1)
    context = jnp.einsum('bhdn,bhen->bhde', k, v)
    out = jnp.einsum('bhde,bhdn->bhen', context, q)
    out = out.reshape(B, heads * dim_head, H, W)
    y = jnp.einsum('bchw,oc->bohw', out, w_out[:, :, 0, 0])
    return y + b_out[None, :, None, None]


if __name__ == "__main__":
    # Module hyper-params (consistent with the PyTorch __init__).
    dim = 4
    heads = 4
    dim_head = 32
    hidden = heads * dim_head

    B, H, W = 2, 16, 16

    key = jax.random.PRNGKey(0)
    k_x, k_wqkv, k_wout, k_bout = jax.random.split(key, 4)

    x = jax.random.normal(k_x, (B, dim, H, W), dtype=jnp.float32)
    # Deterministic synthetic parameters (shapes match nn.Conv2d weights).
    w_qkv = 0.1 * jax.random.normal(k_wqkv, (3 * hidden, dim, 1, 1), dtype=jnp.float32)
    w_out = 0.1 * jax.random.normal(k_wout, (dim, hidden, 1, 1), dtype=jnp.float32)
    b_out = 0.1 * jax.random.normal(k_bout, (dim,), dtype=jnp.float32)

    y = linear_attention_pallas(x, w_qkv, w_out, b_out, heads=heads, dim_head=dim_head)
    y = jax.block_until_ready(y)

    y_ref = linear_attention_ref(x, w_qkv, w_out, b_out, heads=heads, dim_head=dim_head)
    # Tolerance reflects bf16 MXU operands (f32 accumulation) vs. the pure-f32 reference.
    np.testing.assert_allclose(np.asarray(y), np.asarray(y_ref), rtol=2e-2, atol=2e-2)

    print("KERNEL_OK")
</pallas_src>

<mosaic_0001>
module attributes {stable_mosaic.version = 11 : i64} {
  func.func @_linear_attention_kernel(%arg0: i32, %arg1: memref<1x4x256xf32, #tpu.memory_space<vmem>>, %arg2: memref<384x4xf32, #tpu.memory_space<vmem>>, %arg3: memref<4x128xbf16, #tpu.memory_space<vmem>>, %arg4: memref<4x1xf32, #tpu.memory_space<vmem>>, %arg5: memref<128x128xf32, #tpu.memory_space<vmem>>, %arg6: memref<1x4x256xf32, #tpu.memory_space<vmem>>) attributes {dimension_semantics = [#tpu.dimension_semantics<parallel>], iteration_bounds = array<i64: 2>, scalar_prefetch = 0 : i64, scratch_operands = 0 : i64, tpu.core_type = #tpu.core_type<tc>, window_params = [{transform_indices = @transform_0, window_bounds = array<i64: 1, 4, 256>}, {pipeline_mode = #tpu.pipeline_mode<synchronous>, transform_indices = @transform_1, window_bounds = array<i64: 384, 4>}, {pipeline_mode = #tpu.pipeline_mode<synchronous>, transform_indices = @transform_2, window_bounds = array<i64: 4, 128>}, {pipeline_mode = #tpu.pipeline_mode<synchronous>, transform_indices = @transform_3, window_bounds = array<i64: 4, 1>}, {pipeline_mode = #tpu.pipeline_mode<synchronous>, transform_indices = @transform_4, window_bounds = array<i64: 128, 128>}, {transform_indices = @transform_5, window_bounds = array<i64: 1, 4, 256>}]} {
    %c0 = arith.constant 0 : index
    %c0_0 = arith.constant 0 : index
    %c0_1 = arith.constant 0 : index
    %0 = vector.load %arg1[%c0, %c0_0, %c0_1] : memref<1x4x256xf32, #tpu.memory_space<vmem>>, vector<1x4x256xf32>
    %1 = vector.shape_cast %0 : vector<1x4x256xf32> to vector<4x256xf32>
    %c0_2 = arith.constant 0 : index
    %c0_3 = arith.constant 0 : index
    %2 = vector.load %arg2[%c0_2, %c0_3] : memref<384x4xf32, #tpu.memory_space<vmem>>, vector<384x4xf32>
    %3 = vector.extract_strided_slice %2 {offsets = [0, 0], sizes = [384, 1], strides = [1, 1]} : vector<384x4xf32> to vector<384x1xf32>
    %4 = vector.extract_strided_slice %1 {offsets = [0, 0], sizes = [1, 256], strides = [1, 1]} : vector<4x256xf32> to vector<1x256xf32>
    %5 = vector.broadcast %3 : vector<384x1xf32> to vector<384x256xf32>
    %6 = vector.broadcast %4 : vector<1x256xf32> to vector<384x256xf32>
    %7 = arith.mulf %5, %6 : vector<384x256xf32>
    %8 = vector.extract_strided_slice %2 {offsets = [0, 1], sizes = [384, 1], strides = [1, 1]} : vector<384x4xf32> to vector<384x1xf32>
    %9 = vector.extract_strided_slice %1 {offsets = [1, 0], sizes = [1, 256], strides = [1, 1]} : vector<4x256xf32> to vector<1x256xf32>
    %10 = vector.broadcast %8 : vector<384x1xf32> to vector<384x256xf32>
    %11 = vector.broadcast %9 : vector<1x256xf32> to vector<384x256xf32>
    %12 = arith.mulf %10, %11 : vector<384x256xf32>
    %13 = arith.addf %7, %12 : vector<384x256xf32>
    %14 = vector.extract_strided_slice %2 {offsets = [0, 2], sizes = [384, 1], strides = [1, 1]} : vector<384x4xf32> to vector<384x1xf32>
    %15 = vector.extract_strided_slice %1 {offsets = [2, 0], sizes = [1, 256], strides = [1, 1]} : vector<4x256xf32> to vector<1x256xf32>
    %16 = vector.broadcast %14 : vector<384x1xf32> to vector<384x256xf32>
    %17 = vector.broadcast %15 : vector<1x256xf32> to vector<384x256xf32>
    %18 = arith.mulf %16, %17 : vector<384x256xf32>
    %19 = arith.addf %13, %18 : vector<384x256xf32>
    %20 = vector.extract_strided_slice %2 {offsets = [0, 3], sizes = [384, 1], strides = [1, 1]} : vector<384x4xf32> to vector<384x1xf32>
    %21 = vector.extract_strided_slice %1 {offsets = [3, 0], sizes = [1, 256], strides = [1, 1]} : vector<4x256xf32> to vector<1x256xf32>
    %22 = vector.broadcast %20 : vector<384x1xf32> to vector<384x256xf32>
    %23 = vector.broadcast %21 : vector<1x256xf32> to vector<384x256xf32>
    %24 = arith.mulf %22, %23 : vector<384x256xf32>
    %25 = arith.addf %19, %24 : vector<384x256xf32>
    %26 = vector.extract_strided_slice %25 {offsets = [0, 0], sizes = [128, 256], strides = [1, 1]} : vector<384x256xf32> to vector<128x256xf32>
    %27 = vector.extract_strided_slice %25 {offsets = [128, 0], sizes = [128, 256], strides = [1, 1]} : vector<384x256xf32> to vector<128x256xf32>
    %28 = vector.extract_strided_slice %25 {offsets = [256, 0], sizes = [128, 256], strides = [1, 1]} : vector<384x256xf32> to vector<128x256xf32>
    %cst = arith.constant dense<0xFF800000> : vector<128xf32>
    %29 = vector.multi_reduction <maximumf>, %27, %cst [1] : vector<128x256xf32> to vector<128xf32>
    %30 = vector.shape_cast %29 : vector<128xf32> to vector<128x1xf32>
    %31 = vector.broadcast %30 : vector<128x1xf32> to vector<128x256xf32>
    %32 = arith.subf %27, %31 : vector<128x256xf32>
    %33 = math.exp %32 : vector<128x256xf32>
    %cst_4 = arith.constant dense<0.000000e+00> : vector<128xf32>
    %34 = vector.multi_reduction <add>, %33, %cst_4 [1] : vector<128x256xf32> to vector<128xf32>
    %35 = vector.shape_cast %34 : vector<128xf32> to vector<128x1xf32>
    %36 = tpu.reciprocal %35 : vector<128x1xf32> -> vector<128x1xf32>
    %37 = arith.truncf %33 : vector<128x256xf32> to vector<128x256xbf16>
    %38 = arith.truncf %28 : vector<128x256xf32> to vector<128x256xbf16>
    %cst_5 = arith.constant dense<0.000000e+00> : vector<128x128xf32>
    %39 = tpu.matmul %37, %38, %cst_5 {dimension_numbers = #tpu.dot_dimension_numbers<[1], [1], [0], [0], [0, 0, 1, 0], [], []>} : vector<128x256xbf16>, vector<128x256xbf16>, vector<128x128xf32> -> vector<128x128xf32>
    %40 = vector.broadcast %36 : vector<128x1xf32> to vector<128x128xf32>
    %41 = arith.mulf %39, %40 : vector<128x128xf32>
    %c0_6 = arith.constant 0 : index
    %c0_7 = arith.constant 0 : index
    %42 = vector.load %arg5[%c0_6, %c0_7] : memref<128x128xf32, #tpu.memory_space<vmem>>, vector<128x128xf32>
    %43 = arith.mulf %41, %42 : vector<128x128xf32>
    %c0_8 = arith.constant 0 : index
    %c0_9 = arith.constant 0 : index
    %44 = vector.load %arg3[%c0_8, %c0_9] : memref<4x128xbf16, #tpu.memory_space<vmem>>, vector<4x128xbf16>
    %45 = arith.truncf %43 : vector<128x128xf32> to vector<128x128xbf16>
    %cst_10 = arith.constant dense<0.000000e+00> : vector<4x128xf32>
    %46 = tpu.matmul %44, %45, %cst_10 {dimension_numbers = #tpu.dot_dimension_numbers<[1], [1], [0], [0], [0, 0, 1, 0], [], []>} : vector<4x128xbf16>, vector<128x128xbf16>, vector<4x128xf32> -> vector<4x128xf32>
    %47 = arith.truncf %46 : vector<4x128xf32> to vector<4x128xbf16>
    %48 = arith.truncf %26 : vector<128x256xf32> to vector<128x256xbf16>
    %cst_11 = arith.constant dense<0.000000e+00> : vector<4x256xf32>
    %49 = tpu.matmul %47, %48, %cst_11 {dimension_numbers = #tpu.dot_dimension_numbers<[1], [0], [0], [1], [0, 0, 1, 1], [], []>} : vector<4x128xbf16>, vector<128x256xbf16>, vector<4x256xf32> -> vector<4x256xf32>
    %c0_12 = arith.constant 0 : index
    %c0_13 = arith.constant 0 : index
    %50 = vector.load %arg4[%c0_12, %c0_13] : memref<4x1xf32, #tpu.memory_space<vmem>>, vector<4x1xf32>
    %51 = vector.broadcast %50 : vector<4x1xf32> to vector<4x256xf32>
    %52 = arith.addf %49, %51 : vector<4x256xf32>
    %c0_14 = arith.constant 0 : index
    %c0_15 = arith.constant 0 : index
    %c0_16 = arith.constant 0 : index
    %53 = vector.load %arg6[%c0_14, %c0_15, %c0_16] : memref<1x4x256xf32, #tpu.memory_space<vmem>>, vector<1x4x256xf32>
    %54 = vector.shape_cast %53 : vector<1x4x256xf32> to vector<4x256xf32>
    %55 = vector.shape_cast %52 : vector<4x256xf32> to vector<1x4x256xf32>
    tpu.vector_store %arg6[%c0_14, %c0_15, %c0_16], %55 {strides = array<i32>} : memref<1x4x256xf32, #tpu.memory_space<vmem>>, vector<1x4x256xf32>,
    return
  }
  func.func @transform_0(%arg0: i32) -> (i32, i32, i32) {
    %c0_i32 = arith.constant 0 : i32
    %c0_i32_0 = arith.constant 0 : i32
    %c0_i32_1 = arith.constant 0 : i32
    return %arg0, %c0_i32, %c0_i32_0 : i32, i32, i32
  }
  func.func @transform_1(%arg0: i32) -> (i32, i32) {
    %c0_i32 = arith.constant 0 : i32
    %c0_i32_0 = arith.constant 0 : i32
    %c0_i32_1 = arith.constant 0 : i32
    return %c0_i32, %c0_i32_0 : i32, i32
  }
  func.func @transform_2(%arg0: i32) -> (i32, i32) {
    %c0_i32 = arith.constant 0 : i32
    %c0_i32_0 = arith.constant 0 : i32
    %c0_i32_1 = arith.constant 0 : i32
    return %c0_i32, %c0_i32_0 : i32, i32
  }
  func.func @transform_3(%arg0: i32) -> (i32, i32) {
    %c0_i32 = arith.constant 0 : i32
    %c0_i32_0 = arith.constant 0 : i32
    %c0_i32_1 = arith.constant 0 : i32
    return %c0_i32, %c0_i32_0 : i32, i32
  }
  func.func @transform_4(%arg0: i32) -> (i32, i32) {
    %c0_i32 = arith.constant 0 : i32
    %c0_i32_0 = arith.constant 0 : i32
    %c0_i32_1 = arith.constant 0 : i32
    return %c0_i32, %c0_i32_0 : i32, i32
  }
  func.func @transform_5(%arg0: i32) -> (i32, i32, i32) {
    %c0_i32 = arith.constant 0 : i32
    %c0_i32_0 = arith.constant 0 : i32
    %c0_i32_1 = arith.constant 0 : i32
    return %arg0, %c0_i32, %c0_i32_0 : i32, i32, i32
  }
}

</mosaic_0001>

<bundles_post_ra>
// kernel: tpu_custom_call.1
= control target key start
LH: loop header
LB: loop body
LE: loop exit
PB: predicated region body
PF: predicated region fallthrough
CT: control target
= control target key end

     0   :  { %10 = vsyncpa [#allocation3], 0  ;;  %s4706_s0 = inlined_call_operand.vmem [shape: f32[2,4,256], index: 0, kind: input, shape index: {}]   ;;  %s4707_s1 = inlined_call_operand.vmem [shape: f32[384,4], index: 1, kind: input, shape index: {}]   ;;  %s4708_s2 = inlined_call_operand.vmem [shape: bf16[4,128], index: 2, kind: input, shape index: {}]   ;;  %s4709_s3 = inlined_call_operand.vmem [shape: f32[4,1], index: 3, kind: input, shape index: {}]   ;;  %s4710_s4 = inlined_call_operand.vmem [shape: f32[128,128], index: 4, kind: input, shape index: {}]   ;;  %s4711_s5 = inlined_call_operand.hbm [shape: f32[2,4,256], index: 5, kind: output, shape index: {}]  }
   0x1   :  { %12 = vsyncpa [#allocation3 + $0x1], 0  ;;  %s2777_s18 = smov 0   ;;  %s2779_s19 = smov 0  }
   0x2   :  { %s2781_s20 = smov 0   ;;  %s2783_s21 = smov 0  }
   0x3 LB: > { %s2798_s22 = sadd.s32 4294967295, %s2738_s21   ;;  %s2411_s23 = sadd.s32 4294967294, %s2738_s21   ;;  %s2738_s21 = sphi %s2783_s21, %s5033_s21   ;;  %s2734_s20 = sphi %s2781_s20, %s5032_s20   ;;  %s2730_s19 = sphi %s2779_s19, %s5031_s19   ;;  %s2726_s18 = sphi %s2777_s18, %s5030_s18  }
   0x4   : > { %s2802_s24 = sadd.s32 1, %s2738_s21   ;;  %s135_s25 = sadd.s32 1, %s2734_s20 }
   0x5   : > { %s132_s26 = ssub.s32 %s2738_s21, %s2802_s24  ;;  %p145_p0 = scmp.ne.s32.totalorder %s2734_s20, %s2730_s19 }
   0x6   : > { %p133_p1 = scmp.eq.s32.totalorder %s132_s26, 0  ;;  %p146_p2 = scmp.eq.s32.totalorder %s2798_s22, 1 }
   0x7   : > { %p151_p3 = scmp.ne.s32.totalorder %s2730_s19, %s2726_s18  ;;  %p152_p4 = scmp.eq.s32.totalorder %s2411_s23, 1 }
   0x8   : > { %s2813_s27 = scalar_select %p133_p1, %s2734_s20, %s135_s25  }
   0x9   : > { %p2815_p5 = por %p146_p2, %p145_p0  ;;  %p2819_p6 = por %p152_p4, %p151_p3 }
   0xa   : > { %p2414_p7 = scmp.ge.s32.totalorder %s2738_s21, 1  ;;  %p190_p8 = scmp.lt.s32.totalorder %s2738_s21, 3 }
   0xc   : > { %p191_p9 = pnand %p2414_p7, %p190_p8 }
   0xe   : > { %194 = sbr.rel (%p191_p9) target bundleno = 1450 (0x5aa), region = 40 }
  0x15   : > { %v241_v0 = vld [vmem:[%s4707_s1 + $0x80] sm:$0xff]  ;;  %v4712_v1 = vmov 2   ;;  %v4717_v2 = vmov 1   ;;  %v2833_v3 = vld [vmem:[%s4707_s1 + $0x98] sm:$0xff]  ;;  %v2838_v4 = vld [vmem:[%s4707_s1 + $0x88] sm:$0xff]  ;;  %v4724_v7 = vmov 3   ;;  %v514_v62 = vlaneseq }
  0x16   : > { %2500 = vset.pattern.permute.xlu0 %v4712_v1  ;;  %2499 = vset.pattern.permute.xlu1 %v4717_v2  ;;  %v2845_v5 = vld [vmem:[%s4707_s1 + $0xb8] sm:$0xff]  ;;  %v2853_v6 = vld [vmem:[%s4707_s1 + $0xc8] sm:$0xff]  ;;  %v2866_v9 = vld [vmem:[%s4707_s1 + $0x90] sm:$0xff]  ;;  %v4714_v11 = vmov 0   ;;  %p218_p10 = scmp.lt.s32.totalorder %s2798_s22, 1  ;;  %vm2745_vm0 = vmmov 0  }
  0x17   : > { %1095 = vperm.xlu0 %2500, %v241_v0   ;;  %693 = vperm.xlu1 %2499, %v241_v0   ;;  %v2860_v8 = vld [vmem:[%s4707_s1 + $0xd8] sm:$0xff]  ;;  %v2871_v10 = vld [vmem:[%s4707_s1 + $0xe8] sm:$0xff]  ;;  %v2884_v12 = vld [vmem:[%s4707_s1 + $0xa0] sm:$0xff]  ;;  %s215_s14 = sand.u32 1, %s2730_s19   ;;  %s2424_s16 = sshll.u32 %s2798_s22, 7 }
  0x18   : > { %v2892_v13 = vld [vmem:[%s4707_s1 + $0xa8] sm:$0xff]  ;;  %v2900_v14 = vld [vmem:[%s4707_s1 + $0x100] sm:$0xff]  ;;  %v2909_v15 = vld [vmem:[%s4707_s1 + $0xb0] sm:$0xff]  ;;  %s219_s17 = scalar_select %p218_p10, %s2798_s22, 1 }
  0x19   : > { %v2914_v16 = vld [vmem:[%s4707_s1 + $0x110] sm:$0xff]  ;;  %v2925_v17 = vld [vmem:[%s4707_s1 + $0x120] sm:$0xff]  ;;  %v2932_v18 = vld [vmem:[%s4707_s1 + $0x108] sm:$0xff]  ;;  %s2415_s15 = sshll.u32 %s215_s14, 3  ;;  %s2338_s6 = scalar_lea.sflag [#allocation3], %s215_s14 }
  0x1a   : > { %v2940_v19 = vld [vmem:[%s4707_s1 + $0x130] sm:$0xff]  ;;  %v2947_v20 = vld [vmem:[%s4707_s1 + $0xf8] sm:$0xff]  ;;  %v2954_v21 = vld [vmem:[%s4707_s1 + $0xc0] sm:$0xff]  ;;  %s2423_s23 = sshll.u32 %s219_s17, 3  ;;  %s217_s17 = scalar_lea.vmem [#allocation2], %s2415_s15 }
  0x1b   : > { %1107 = vperm.xlu0 %2500, %v2833_v3   ;;  %697 = vperm.xlu1 %2499, %v2838_v4   ;;  %v2959_v22 = vld [vmem:[%s4707_s1 + $0x140] sm:$0xff]  ;;  %v2967_v23 = vld [vmem:[%s4707_s1 + $0x158] sm:$0xff]  ;;  %v2989_v25 = vld [vmem:[%s4707_s1 + $0xd0] sm:$0xff]  ;;  %s222_s30 = scalar_lea.vmem %s4706_s0, %s2423_s23  ;;  %s2352_s23 = sshll.u32 %s217_s17, 4  ;;  %s4666_s23 = int_to_ptr.vmem [resolvable:$true] %s2352_s23 }
  0x1c   : > { %v2978_v24 = vld [vmem:[%s4707_s1 + $0x118] sm:$0xff]  ;;  %v3003_v26 = vld [vmem:[%s4707_s1 + $0x160] sm:$0xff]  ;;  %v3008_v27 = vld [vmem:[%s4707_s1 + $0x128] sm:$0xff]  ;;  %s2676_s7 = scalar_lea.vmem %s4666_s23, 128  ;;  %s2746_s22 = smov [#allocation2]  }
  0x1d   : > { %v3020_v28 = vld [vmem:[%s4707_s1 + $0xe0] sm:$0xff]  ;;  %v3038_v33 = vld [vmem:[%s4707_s1 + $0x138] sm:$0xff]  ;;  %v3053_v37 = vld [vmem:[%s4707_s1 + $0xf0] sm:$0xff]  ;;  %p2677_p11 = scmp.ne.s32.totalorder %s4666_s23, %s2676_s7  ;;  %s2680_s8 = sshll.u32 %s2746_s22, 4  ;;  %s2681_s8 = int_to_ptr.vmem [resolvable:$false] %s2680_s8 }
  0x1e   : > { %v3075_v44 = vld [vmem:[%s4707_s1 + $0x148] sm:$0xff]  ;;  %v3092_v49 = vld [vmem:[%s4707_s1 + $0x150] sm:$0xff]  ;;  %s2682_s9 = scalar_lea.vmem %s2681_s8, 256  ;;  %p2683_p0 = scmp.lt.s32.totalorder %s4666_s23, %s2681_s8 }
  0x1f   : > { %1123 = vperm.xlu0 %2500, %v2845_v5   ;;  %2501 = vset.pattern.permute.xlu1 %v4712_v1  ;;  %v3118_v57 = vld [vmem:[%s4707_s1 + $0x168] sm:$0xff]  ;;  %p2678_p12 = pnand %p2677_p11, %p2815_p5  ;;  %p2684_p1 = scmp.lt.s32.totalorder %s2682_s9, %s2676_s7 }
  0x20   : > { %1099 = vperm.xlu1 %2501, %v2838_v4  }
  0x21   : > { %p2679_p13 = pneg %p2678_p12  ;;  %p2685_p2 = por %p2684_p1, %p2683_p0 }
  0x23   : > { %1131 = vperm.xlu0 %2500, %v2853_v6   ;;  %p2686_p3 = pnand %p2685_p2, %p2679_p13 }
  0x24   : > { %2502 = vset.pattern.permute.xlu1 %v4724_v7 }
  0x25   : > { %1497 = vperm.xlu1 %2502, %v241_v0  }
  0x27   : > { %1139 = vperm.xlu0 %2500, %v2860_v8  }
  0x29   : > { %2503 = vset.pattern.permute.xlu1 %v4714_v11 }
  0x2a   : > { %365 = vperm.xlu1 %2503, %v2866_v9  }
  0x2b   : > { %1147 = vperm.xlu0 %2500, %v2871_v10  }
  0x2e   : > { %370 = vperm.xlu1 %2503, %v2833_v3  }
  0x2f   : > { %2524 = vset.pattern.permute.xlu0 %v4714_v11 }
  0x30   : > { %355 = vperm.xlu0 %2524, %v241_v0   ;;  %v515_v0 = vshrl.u32 %v514_v62, 7 }
  0x32   : > { %2504 = vset.pattern.permute.xlu1 %v4717_v2 }
  0x33   : > { %705 = vperm.xlu1 %2504, %v2833_v3  }
  0x34   : > { %360 = vperm.xlu0 %2524, %v2838_v4  }
  0x37   : > { %2505 = vset.pattern.permute.xlu1 %v4712_v1 }
  0x38   : > { %375 = vperm.xlu0 %2524, %v2884_v12   ;;  %1103 = vperm.xlu1 %2505, %v2866_v9  }
  0x3c   : > { %390 = vperm.xlu0 %2524, %v2845_v5   ;;  %2506 = vset.pattern.permute.xlu1 %v4714_v11 }
  0x3d   : > { %380 = vperm.xlu1 %2506, %v2892_v13  }
  0x40   : > { %435 = vperm.xlu0 %2524, %v2900_v14  }
  0x41   : > { %2507 = vset.pattern.permute.xlu1 %v4717_v2 }
  0x42   : > { %709 = vperm.xlu1 %2507, %v2884_v12  }
  0x44   : > { %400 = vperm.xlu0 %2524, %v2853_v6  }
  0x46   : > { %2508 = vset.pattern.permute.xlu1 %v4714_v11 }
  0x47   : > { %385 = vperm.xlu1 %2508, %v2909_v15  }
  0x48   : > { %445 = vperm.xlu0 %2524, %v2914_v16  }
  0x4b   : > { %2509 = vset.pattern.permute.xlu1 %v4717_v2 }
  0x4c   : > { %410 = vperm.xlu0 %2524, %v2860_v8   ;;  %717 = vperm.xlu1 %2509, %v2909_v15  }
  0x50   : > { %455 = vperm.xlu0 %2524, %v2925_v17   ;;  %721 = vperm.xlu1 %2509, %v2845_v5  }
  0x54   : > { %420 = vperm.xlu0 %2524, %v2871_v10   ;;  %2510 = vset.pattern.permute.xlu1 %v4714_v11 }
  0x55   : > { %440 = vperm.xlu1 %2510, %v2932_v18  }
  0x58   : > { %465 = vperm.xlu0 %2524, %v2940_v19  }
  0x59   : > { %2511 = vset.pattern.permute.xlu1 %v4717_v2 }
  0x5a   : > { %761 = vperm.xlu1 %2511, %v2932_v18  }
  0x5c   : > { %430 = vperm.xlu0 %2524, %v2947_v20  }
  0x5e   : > { %2512 = vset.pattern.permute.xlu1 %v4714_v11 }
  0x5f   : > { %395 = vperm.xlu1 %2512, %v2954_v21  }
  0x60   : > { %475 = vperm.xlu0 %2524, %v2959_v22  }
  0x63   : > { %2513 = vset.pattern.permute.xlu1 %v4717_v2 }
  0x64   : > { %490 = vperm.xlu0 %2524, %v2967_v23   ;;  %725 = vperm.xlu1 %2513, %v2954_v21  }
  0x68   : > { %2530 = vset.pattern.permute.xlu0 %v4717_v2  ;;  %729 = vperm.xlu1 %2513, %v2853_v6  }
  0x69   : > { %701 = vperm.xlu0 %2530, %v2866_v9  }
  0x6c   : > { %2514 = vset.pattern.permute.xlu1 %v4714_v11 }
  0x6d   : > { %713 = vperm.xlu0 %2530, %v2892_v13   ;;  %450 = vperm.xlu1 %2514, %v2978_v24  }
  0x71   : > { %757 = vperm.xlu0 %2530, %v2900_v14   ;;  %2515 = vset.pattern.permute.xlu1 %v4717_v2 }
  0x72   : > { %769 = vperm.xlu1 %2515, %v2978_v24  }
  0x75   : > { %765 = vperm.xlu0 %2530, %v2914_v16  }
  0x76   : > { %2516 = vset.pattern.permute.xlu1 %v4714_v11 }
  0x77   : > { %405 = vperm.xlu1 %2516, %v2989_v25  }
  0x79   : > { %773 = vperm.xlu0 %2530, %v2925_v17  }
  0x7b   : > { %2517 = vset.pattern.permute.xlu1 %v4717_v2 }
  0x7c   : > { %733 = vperm.xlu1 %2517, %v2989_v25  }
  0x7d   : > { %781 = vperm.xlu0 %2530, %v2940_v19  }
  0x80   : > { %737 = vperm.xlu1 %2517, %v2860_v8  }
  0x81   : > { %789 = vperm.xlu0 %2530, %v2959_v22  }
  0x84   : > { %2518 = vset.pattern.permute.xlu1 %v4714_v11 }
  0x85   : > { %805 = vperm.xlu0 %2530, %v3003_v26   ;;  %460 = vperm.xlu1 %2518, %v3008_v27  }
  0x89   : > { %2533 = vset.pattern.permute.xlu0 %v4724_v7  ;;  %2519 = vset.pattern.permute.xlu1 %v4717_v2 }
  0x8a   : > { %1501 = vperm.xlu0 %2533, %v2838_v4   ;;  %777 = vperm.xlu1 %2519, %v3008_v27  }
  0x8e   : > { %2520 = vset.pattern.permute.xlu1 %v4714_v11 }
  0x8f   : > { %415 = vperm.xlu1 %2520, %v3020_v28  }
  0x93   : > { %2521 = vset.pattern.permute.xlu1 %v4717_v2 }
  0x94   : > { %741 = vperm.xlu1 %2521, %v3020_v28  }
  0x96   : > { %v3026_v29 = vpop.permute.xlu1 %693  ;;  %v3028_v30 = vpop.permute.xlu0 %1095 }
  0x98   : > { %745 = vperm.xlu1 %2521, %v2871_v10  }
  0x9a   : > { %v3031_v31 = vpop.permute.xlu1 %697  ;;  %v3033_v32 = vpop.permute.xlu0 %1107 }
  0x9c   : > { %2522 = vset.pattern.permute.xlu1 %v4714_v11 }
  0x9d   : > { %470 = vperm.xlu1 %2522, %v3038_v33  }
  0x9e   : > { %v3042_v34 = vpop.permute.xlu0 %1123 }
  0x9f   : > { %4818 = vst [vmem:[#allocation5_spill] sm:$0xff] %v3042_v34  ;;  %v3044_v35 = vpop.permute.xlu1 %1099 }
  0xa1   : > { %2523 = vset.pattern.permute.xlu1 %v4717_v2 }
  0xa2   : > { %785 = vperm.xlu1 %2523, %v3038_v33   ;;  %v3048_v36 = vpop.permute.xlu0 %1131 }
  0xa3   : > { %4819 = vst [vmem:[#allocation6_spill] sm:$0xff] %v3048_v36 }
  0xa4   : > { %v3055_v38 = vpop.permute.xlu1 %1497 }
  0xa6   : > { %2525 = vset.pattern.permute.xlu1 %v4714_v11  ;;  %v3058_v39 = vpop.permute.xlu0 %1139 }
  0xa7   : > { %4820 = vst [vmem:[#allocation7_spill] sm:$0xff] %v3058_v39  ;;  %425 = vperm.xlu1 %2525, %v3053_v37  }
  0xa9   : > { %v3063_v41 = vpop.permute.xlu1 %365 }
  0xaa   : > { %v3061_v40 = vpop.permute.xlu0 %1147 }
  0xab   : > { %4821 = vst [vmem:[#allocation8_spill] sm:$0xff] %v3061_v40  ;;  %2526 = vset.pattern.permute.xlu1 %v4717_v2  ;;  %v1630_v40 = vsub.s32 7, %v515_v0 }
  0xac   : > { %749 = vperm.xlu1 %2526, %v3053_v37  }
  0xad   : > { %v3070_v43 = vpop.permute.xlu1 %370 }
  0xaf   : > { %v3067_v42 = vpop.permute.xlu0 %355 }
  0xb0   : > { %753 = vperm.xlu1 %2526, %v2947_v20  }
  0xb2   : > { %v3081_v46 = vpop.permute.xlu1 %705 }
  0xb3   : > { %v3077_v45 = vpop.permute.xlu0 %360 }
  0xb4   : > { %2527 = vset.pattern.permute.xlu1 %v4714_v11 }
  0xb5   : > { %480 = vperm.xlu1 %2527, %v3075_v44  }
  0xb7   : > { %v3083_v47 = vpop.permute.xlu0 %375  ;;  %v3094_v50 = vpop.permute.xlu1 %1103 }
  0xb8   : > { %4822 = vst [vmem:[#allocation9_spill] sm:$0xff] %v3083_v47 }
  0xb9   : > { %2528 = vset.pattern.permute.xlu1 %v4717_v2 }
  0xba   : > { %793 = vperm.xlu1 %2528, %v3075_v44  }
  0xbb   : > { %v3087_v48 = vpop.permute.xlu0 %390 }
  0xbc   : > { %4823 = vst [vmem:[#allocation10_spill] sm:$0xff] %v3087_v48  ;;  %v3100_v52 = vpop.permute.xlu1 %380  ;;  %v1626_v48 = vsub.s32 3, %v515_v0 }
  0xbd   : > { %4825 = vst [vmem:[#allocation12_spill] sm:$0xff] %v3100_v52 }
  0xbe   : > { %2529 = vset.pattern.permute.xlu1 %v4714_v11 }
  0xbf   : > { %485 = vperm.xlu1 %2529, %v3092_v49   ;;  %v3098_v51 = vpop.permute.xlu0 %435 }
  0xc0   : > { %4824 = vst [vmem:[#allocation11_spill] sm:$0xff] %v3098_v51 }
  0xc1   : > { %v3109_v55 = vpop.permute.xlu1 %709 }
  0xc2   : > { %4828 = vst [vmem:[#allocation15_spill] sm:$0xff] %v3109_v55 }
  0xc3   : > { %2531 = vset.pattern.permute.xlu1 %v4717_v2  ;;  %v3103_v53 = vpop.permute.xlu0 %400 }
  0xc4   : > { %4826 = vst [vmem:[#allocation13_spill] sm:$0xff] %v3103_v53  ;;  %797 = vperm.xlu1 %2531, %v3092_v49  }
  0xc6   : > { %v3120_v58 = vpop.permute.xlu1 %385 }
  0xc7   : > { %v3106_v54 = vpop.permute.xlu0 %445  ;;  %4830 = vst [vmem:[#allocation17_spill] sm:$0xff] %v3120_v58  ;;  %v1228_v58 = vsub.s32 6, %v515_v0 }
  0xc8   : > { %4827 = vst [vmem:[#allocation14_spill] sm:$0xff] %v3106_v54  ;;  %801 = vperm.xlu1 %2531, %v2967_v23  }
  0xcb   : > { %v3111_v56 = vpop.permute.xlu0 %410  ;;  %v3129_v61 = vpop.permute.xlu1 %717 }
  0xcc   : > { %4829 = vst [vmem:[#allocation16_spill] sm:$0xff] %v3111_v56  ;;  %2532 = vset.pattern.permute.xlu1 %v4714_v11  ;;  %4833 = vst [vmem:[#allocation20_spill] sm:$0xff] %v3129_v61  ;;  %v822_v11 = vsub.s32 1, %v515_v0  ;;  %v224_v56 = vld [vmem:[%s222_s30] sm:$0xff]  ;;  %s4664_s30 = scalar_lea.hbm %s4711_s5, %s2424_s16 }
  0xcd   : > { %495 = vperm.xlu1 %2532, %v3003_v26   ;;  %v1229_v52 = vrot.slane %v224_v56, %v1228_v58 }
  0xcf   : > { %v3122_v59 = vpop.permute.xlu0 %455  ;;  %v3136_v4 = vpop.permute.xlu1 %721 }
  0xd0   : > { %4831 = vst [vmem:[#allocation18_spill] sm:$0xff] %v3122_v59  ;;  %4835 = vst [vmem:[#allocation22_spill] sm:$0xff] %v3136_v4  ;;  %v520_v59 = vsub.s32 4, %v515_v0 }
  0xd1   : > { %500 = vperm.xlu1 %2532, %v3118_v57  }
  0xd2   : > { %v521_v51 = vrot.slane %v224_v56, %v520_v59 }
  0xd3   : > { %v3126_v60 = vpop.permute.xlu0 %420 }
  0xd4   : > { %4832 = vst [vmem:[#allocation19_spill] sm:$0xff] %v3126_v60  ;;  %v826_v60 = vsub.s32 5, %v515_v0  ;;  %v3145_v62 = vpop.permute.xlu1 %440 }
  0xd5   : > { %2534 = vset.pattern.permute.xlu1 %v4717_v2  ;;  %v516_v2 = vsub.s32 0, %v515_v0  ;;  %4838 = vst [vmem:[#allocation25_spill] sm:$0xff] %v3145_v62 }
  0xd6   : > { %809 = vperm.xlu1 %2534, %v3118_v57   ;;  %v827_v53 = vrot.slane %v224_v56, %v826_v60 }
  0xd7   : > { %v3133_v63 = vpop.permute.xlu0 %465  ;;  %v517_v61 = vrot.slane %v224_v56, %v516_v2 }
  0xd8   : > { %4834 = vst [vmem:[#allocation21_spill] sm:$0xff] %v3133_v63  ;;  %v1224_v63 = vsub.s32 2, %v515_v0  ;;  %v3151_v47 = vrot.slane %v827_v53, %v822_v11  ;;  %v1631_v53 = vrot.slane %v224_v56, %v1630_v40 }
  0xd9   : > { %v3153_v39 = vrot.slane %v517_v61, %v516_v2  ;;  %v3157_v36 = vpop.permute.xlu1 %761 }
  0xda   : > { %2535 = vset.pattern.permute.xlu1 %v4724_v7  ;;  %v823_v7 = vrot.slane %v224_v56, %v822_v11  ;;  %v1225_v4 = vrot.slane %v224_v56, %v1224_v63  ;;  %4840 = vst [vmem:[#allocation27_spill] sm:$0xff] %v3151_v47  ;;  %4842 = vst [vmem:[#allocation29_spill] sm:$0xff] %v3157_v36  ;;  %v3183_v36 = vrot.slane %v1631_v53, %v1626_v48 }
  0xdb   : > { %v3138_v1 = vpop.permute.xlu0 %430  ;;  %v564_v60 = vmul.f32 %v3153_v39, %v3067_v42 }
  0xdc   : > { %4836 = vst [vmem:[#allocation23_spill] sm:$0xff] %v3138_v1  ;;  %v3149_v55 = vrot.slane %v823_v7, %v822_v11  ;;  %v3165_v58 = vrot.slane %v1225_v4, %v1224_v63  ;;  %v3167_v7 = vrot.slane %v1229_v52, %v1224_v63 }
  0xde   : > { %v870_v11 = vmul.f32 %v3149_v55, %v3026_v29  ;;  %v1272_v61 = vmul.f32 %v3165_v58, %v3028_v30  ;;  %v3179_v52 = vpop.permute.xlu1 %395 }
  0xdf   : > { %v3143_v54 = vpop.permute.xlu0 %475 }
  0xe0   : > { %4837 = vst [vmem:[#allocation24_spill] sm:$0xff] %v3143_v54  ;;  %v3155_v54 = vrot.slane %v521_v51, %v516_v2  ;;  %v871_v2 = vmul.f32 %v3151_v47, %v3026_v29  ;;  %v1627_v51 = vrot.slane %v224_v56, %v1626_v48  ;;  %v966_v0 = vadd.f32 %v870_v11, %v564_v60 }
  0xe2   : > { %4841 = vst [vmem:[#allocation28_spill] sm:$0xff] %v3155_v54  ;;  %v565_v59 = vmul.f32 %v3155_v54, %v3067_v42  ;;  %v1273_v42 = vmul.f32 %v3167_v7, %v3028_v30  ;;  %v3181_v63 = vrot.slane %v1627_v51, %v1626_v48  ;;  %v1368_v29 = vadd.f32 %v1272_v61, %v966_v0 }
  0xe3   : > { %v3147_v1 = vpop.permute.xlu0 %490  ;;  %v1675_v30 = vmul.f32 %v3183_v36, %v3055_v38  ;;  %v3191_v60 = vpop.permute.xlu1 %725  ;;  %v567_v0 = vmul.f32 %v3155_v54, %v3077_v45 }
  0xe4   : > { %4839 = vst [vmem:[#allocation26_spill] sm:$0xff] %v3147_v1  ;;  %v967_v62 = vadd.f32 %v871_v2, %v565_v59  ;;  %v1674_v56 = vmul.f32 %v3181_v63, %v3055_v38 }
  0xe6   : > { %v1369_v40 = vadd.f32 %v1273_v42, %v967_v62  ;;  %v3195_v11 = vadd.f32 %v1674_v56, %v1368_v29  ;;  %v566_v42 = vmul.f32 %v3153_v39, %v3077_v45  ;;  %v872_v29 = vmul.f32 %v3149_v55, %v3031_v31 }
  0xe7   : > { %v3203_v62 = vpop.permute.xlu1 %729 }
  0xe8   : > { %v3163_v1 = vpop.permute.xlu0 %701  ;;  %4846 = vst [vmem:[#allocation33_spill] sm:$0xff] %v3195_v11  ;;  %v3197_v2 = vadd.f32 %v1675_v30, %v1369_v40  ;;  %v873_v40 = vmul.f32 %v3151_v47, %v3031_v31 }
  0xea   : > { %v1834_v51 = vmax.f32 %v3195_v11, %v3197_v2  ;;  %v969_v11 = vadd.f32 %v873_v40, %v567_v0  ;;  %v4868_v40 = vmov 1  }
  0xec   : > { %v3177_v4 = vpop.permute.xlu0 %713  ;;  %v3207_v61 = vpop.permute.xlu1 %450 }
  0xed   : > { %4843 = vst [vmem:[#allocation30_spill] sm:$0xff] %v3177_v4  ;;  %4849 = vst [vmem:[#allocation36_spill] sm:$0xff] %v3207_v61 }
  0xf0   : > { %v3185_v34 = vpop.permute.xlu0 %757 }
  0xf1   : > { %4844 = vst [vmem:[#allocation31_spill] sm:$0xff] %v3185_v34  ;;  %v3221_v30 = vpop.permute.xlu1 %769 }
  0xf2   : > { %4852 = vst [vmem:[#allocation39_spill] sm:$0xff] %v3221_v30 }
  0xf4   : > { %v3193_v59 = vpop.permute.xlu0 %765 }
  0xf5   : > { %4845 = vst [vmem:[#allocation32_spill] sm:$0xff] %v3193_v59 }
  0xf6   : > { %v3229_v31 = vpop.permute.xlu1 %405 }
  0xf7   : > { %4853 = vst [vmem:[#allocation40_spill] sm:$0xff] %v3229_v31 }
  0xf8   : > { %v3199_v48 = vpop.permute.xlu0 %773 }
  0xf9   : > { %4847 = vst [vmem:[#allocation34_spill] sm:$0xff] %v3199_v48 }
  0xfa   : > { %1835 = vmax.xlane.f32.xlu1 %v1834_v51  ;;  %v968_v51 = vadd.f32 %v872_v29, %v566_v42 }
  0xfc   : > { %v3205_v53 = vpop.permute.xlu0 %781 }
  0xfd   : > { %4848 = vst [vmem:[#allocation35_spill] sm:$0xff] %v3205_v53  ;;  %v1275_v53 = vmul.f32 %v3167_v7, %v3044_v35 }
  0xff   : > { %v1371_v34 = vadd.f32 %v1275_v53, %v969_v11  ;;  %v4865_v53 = vmov 0  }
 0x100   : > { %v3209_v38 = vpop.permute.xlu0 %789 }
 0x101   : > { %4850 = vst [vmem:[#allocation37_spill] sm:$0xff] %v3209_v38  ;;  %v1274_v38 = vmul.f32 %v3165_v58, %v3044_v35  ;;  %v3239_v35 = vpop.permute.xlu1 %733 }
 0x102   : > { %4855 = vst [vmem:[#allocation42_spill] sm:$0xff] %v3239_v35 }
 0x103   : > { %v1370_v61 = vadd.f32 %v1274_v38, %v968_v51  ;;  %v3285_v38 = vld [vmem:[%s4707_s1 + $0x178] sm:$0xff] }
 0x104   : > { %v3219_v56 = vpop.permute.xlu0 %805 }
 0x105   : > { %4851 = vst [vmem:[#allocation38_spill] sm:$0xff] %v3219_v56 }
 0x109   : > { %v1502_v48 = vpop.permute.xlu0 %1501 }
 0x10a   : > { %v1676_v45 = vmul.f32 %v3181_v63, %v1502_v48  ;;  %v1677_v59 = vmul.f32 %v3183_v36, %v1502_v48  ;;  %v3242_v48 = vpop.permute.xlu1 %737 }
 0x10b   : > { %1505 = vperm.xlu1 %2535, %v2866_v9   ;;  %4856 = vst [vmem:[#allocation43_spill] sm:$0xff] %v3242_v48 }
 0x10c   : > { %v3232_v56 = vadd.f32 %v1676_v45, %v1370_v61  ;;  %v3234_v42 = vadd.f32 %v1677_v59, %v1371_v34  ;;  %v4870_v45 = vmov 2  }
 0x10e   : > { %4854 = vst [vmem:[#allocation41_spill] sm:$0xff] %v3232_v56  ;;  %v1837_v0 = vmax.f32 %v3232_v56, %v3234_v42  ;;  %v3246_v9 = vpop.permute.xlu1 %460 }
 0x10f   : > { %1509 = vperm.xlu1 %2535, %v2833_v3   ;;  %4857 = vst [vmem:[#allocation44_spill] sm:$0xff] %v3246_v9 }
 0x110   : > { %1838 = vmax.xlane.f32.xlu0 %v1837_v0 }
 0x112   : > { %v3249_v34 = vpop.permute.xlu1 %777 }
 0x113   : > { %1517 = vperm.xlu1 %2535, %v2892_v13   ;;  %4858 = vst [vmem:[#allocation45_spill] sm:$0xff] %v3249_v34  ;;  %v1278_v34 = vmul.f32 %v3165_v58, %v3033_v32 }
 0x116   : > { %v3253_v3 = vpop.permute.xlu1 %415 }
 0x117   : > { %1525 = vperm.xlu1 %2535, %v2845_v5   ;;  %4859 = vst [vmem:[#allocation46_spill] sm:$0xff] %v3253_v3  ;;  %v570_v3 = vmul.f32 %v3153_v39, %v3070_v43 }
 0x11a   : > { %v3256_v59 = vpop.permute.xlu1 %741 }
 0x11b   : > { %1561 = vperm.xlu1 %2535, %v2900_v14   ;;  %4860 = vst [vmem:[#allocation47_spill] sm:$0xff] %v3256_v59  ;;  %v1276_v59 = vmul.f32 %v3165_v58, %v3094_v50 }
 0x11e   : > { %v3260_v5 = vpop.permute.xlu1 %745 }
 0x11f   : > { %1533 = vperm.xlu1 %2535, %v2853_v6   ;;  %4861 = vst [vmem:[#allocation48_spill] sm:$0xff] %v3260_v5 }
 0x122   : > { %v3263_v6 = vpop.permute.xlu1 %470 }
 0x123   : > { %1569 = vperm.xlu1 %2535, %v2914_v16   ;;  %4862 = vst [vmem:[#allocation49_spill] sm:$0xff] %v3263_v6  ;;  %v875_v6 = vmul.f32 %v3151_v47, %v3163_v1 }
 0x127   : > { %1541 = vperm.xlu1 %2535, %v2860_v8   ;;  %v3267_v8 = vpop.permute.xlu1 %785 }
 0x128   : > { %4863 = vst [vmem:[#allocation50_spill] sm:$0xff] %v3267_v8 }
 0x12b   : > { %1577 = vperm.xlu1 %2535, %v2925_v17   ;;  %v3270_v11 = vpop.permute.xlu1 %425 }
 0x12c   : > { %4864 = vst [vmem:[#allocation51_spill] sm:$0xff] %v3270_v11 }
 0x12f   : > { %1549 = vperm.xlu1 %2535, %v2871_v10   ;;  %v3276_v10 = vld [vmem:[%s4707_s1 + $0x170] sm:$0xff]  ;;  %v3280_v61 = vpop.permute.xlu1 %749 }
 0x130   : > { %4866 = vst [vmem:[#allocation52_spill] sm:$0xff] %v3280_v61 }
 0x133   : > { %1585 = vperm.xlu1 %2535, %v2940_v19   ;;  %v3288_v29 = vpop.permute.xlu1 %753 }
 0x134   : > { %4867 = vst [vmem:[#allocation53_spill] sm:$0xff] %v3288_v29 }
 0x137   : > { %1557 = vperm.xlu1 %2535, %v2947_v20   ;;  %v3292_v51 = vpop.permute.xlu1 %480 }
 0x138   : > { %4869 = vst [vmem:[#allocation54_spill] sm:$0xff] %v3292_v51  ;;  %v874_v51 = vmul.f32 %v3149_v55, %v3163_v1  ;;  %v571_v1 = vmul.f32 %v3155_v54, %v3070_v43 }
 0x13b   : > { %1593 = vperm.xlu1 %2535, %v2959_v22   ;;  %v3296_v0 = vpop.permute.xlu1 %793 }
 0x13c   : > { %4871 = vst [vmem:[#allocation55_spill] sm:$0xff] %v3296_v0  ;;  %v568_v0 = vmul.f32 %v3153_v39, %v3063_v41 }
 0x13f   : > { %1601 = vperm.xlu1 %2535, %v3092_v49   ;;  %v3298_v56 = vpop.permute.xlu1 %485 }
 0x140   : > { %4872 = vst [vmem:[#allocation56_spill] sm:$0xff] %v3298_v56  ;;  %v569_v56 = vmul.f32 %v3155_v54, %v3063_v41  ;;  %v1277_v41 = vmul.f32 %v3167_v7, %v3094_v50 }
 0x143   : > { %1609 = vperm.xlu1 %2535, %v3003_v26   ;;  %v3300_v11 = vpop.permute.xlu1 %797 }
 0x144   : > { %4873 = vst [vmem:[#allocation57_spill] sm:$0xff] %v3300_v11  ;;  %v971_v11 = vadd.f32 %v875_v6, %v569_v56 }
 0x146   : > { %v1373_v5 = vadd.f32 %v1277_v41, %v971_v11  ;;  %v4901_v41 = vld [vmem:[#allocation15_spill] sm:$0xff] }
 0x147   : > { %1613 = vperm.xlu1 %2535, %v3118_v57   ;;  %v3302_v61 = vpop.permute.xlu1 %801 }
 0x148   : > { %4874 = vst [vmem:[#allocation58_spill] sm:$0xff] %v3302_v61  ;;  %v876_v61 = vmul.f32 %v3149_v55, %v3081_v46 }
 0x14b   : > { %2536 = vset.pattern.permute.xlu1 %v4865_v53 }
 0x14c   : > { %505 = vperm.xlu1 %2536, %v3276_v10   ;;  %v3304_v8 = vpop.permute.xlu1 %495 }
 0x14d   : > { %4875 = vst [vmem:[#allocation59_spill] sm:$0xff] %v3304_v8 }
 0x150   : > { %510 = vperm.xlu1 %2536, %v3285_v38   ;;  %v3306_v29 = vpop.permute.xlu1 %500 }
 0x151   : > { %4876 = vst [vmem:[#allocation60_spill] sm:$0xff] %v3306_v29  ;;  %v877_v29 = vmul.f32 %v3151_v47, %v3081_v46  ;;  %v1279_v46 = vmul.f32 %v3167_v7, %v3033_v32 }
 0x153   : > { %v973_v56 = vadd.f32 %v877_v29, %v571_v1 }
 0x154   : > { %2537 = vset.pattern.permute.xlu1 %v4868_v40 }
 0x155   : > { %813 = vperm.xlu1 %2537, %v3276_v10   ;;  %v3308_v40 = vpop.permute.xlu1 %809 }
 0x156   : > { %4877 = vst [vmem:[#allocation61_spill] sm:$0xff] %v3308_v40  ;;  %v970_v40 = vadd.f32 %v874_v51, %v568_v0  ;;  %v972_v51 = vadd.f32 %v876_v61, %v570_v3  ;;  %v1375_v3 = vadd.f32 %v1279_v46, %v973_v56  ;;  %v878_v46 = vmul.f32 %v3149_v55, %v4901_v41 }
 0x158   : > { %v1372_v0 = vadd.f32 %v1276_v59, %v970_v40  ;;  %v1374_v48 = vadd.f32 %v1278_v34, %v972_v51  ;;  %v879_v51 = vmul.f32 %v3151_v47, %v4901_v41  ;;  %v4909_v41 = vld [vmem:[#allocation20_spill] sm:$0xff] }
 0x159   : > { %817 = vperm.xlu1 %2537, %v3285_v38  }
 0x15d   : > { %2538 = vset.pattern.permute.xlu1 %v4870_v45 }
 0x187   : > { %v3322_v8 = vpop.xlane.xlu1 %1835 }
 0x188   : > { %4878 = vst [vmem:[#allocation62_spill] sm:$0xff] %v3322_v8  ;;  %v1883_v34 = vsub.f32 %v3197_v2, %v3322_v8 }
 0x18a   : > { %v1916_v61 = vmul.f32 1.442695, %v1883_v34  ;;  %v4906_v34 = vld [vmem:[#allocation12_spill] sm:$0xff] }
 0x18b   : > { %v1506_v6 = vpop.permute.xlu1 %1505 }
 0x18c   : > { %v1678_v9 = vmul.f32 %v3181_v63, %v1506_v6  ;;  %v1679_v43 = vmul.f32 %v3183_v36, %v1506_v6  ;;  %2580 = vpow2.f32 %v1916_v61  ;;  %v4902_v6 = vld [vmem:[#allocation8_spill] sm:$0xff]  ;;  %v574_v61 = vmul.f32 %v3153_v39, %v4906_v34 }
 0x18e   : > { %v3338_v31 = vadd.f32 %v1678_v9, %v1372_v0  ;;  %v3340_v35 = vadd.f32 %v1679_v43, %v1373_v5  ;;  %v3465_v0 = vmul.f32 %v3165_v58, %v4902_v6  ;;  %v3469_v43 = vmul.f32 %v3167_v7, %v4902_v6 }
 0x18f   : > { %v1510_v50 = vpop.permute.xlu1 %1509  ;;  %v882_v6 = vmul.f32 %v3149_v55, %v4909_v41 }
 0x190   : > { %4879 = vst [vmem:[#allocation63_spill] sm:$0xff] %v3338_v31  ;;  %4880 = vst [vmem:[#allocation64_spill] sm:$0xff] %v3340_v35  ;;  %v1680_v30 = vmul.f32 %v3181_v63, %v1510_v50  ;;  %v1681_v4 = vmul.f32 %v3183_v36, %v1510_v50  ;;  %v1840_v32 = vmax.f32 %v3338_v31, %v3340_v35  ;;  %v4904_v50 = vld [vmem:[#allocation10_spill] sm:$0xff]  ;;  %v4922_v31 = vld [vmem:[#allocation23_spill] sm:$0xff] }
 0x192   : > { %1841 = vmax.xlane.f32.xlu1 %v1840_v32  ;;  %v3346_v59 = vadd.f32 %v1680_v30, %v1374_v48  ;;  %v3348_v11 = vadd.f32 %v1681_v4, %v1375_v3  ;;  %v578_v32 = vmul.f32 %v3153_v39, %v4904_v50 }
 0x194   : > { %4881 = vst [vmem:[#allocation65_spill] sm:$0xff] %v3346_v59  ;;  %4882 = vst [vmem:[#allocation66_spill] sm:$0xff] %v3348_v11  ;;  %v1843_v9 = vmax.f32 %v3346_v59, %v3348_v11 }
 0x196   : > { %1844 = vmax.xlane.f32.xlu0 %v1843_v9  ;;  %v3361_v4 = vpop.eup %2580  ;;  %v579_v9 = vmul.f32 %v3155_v54, %v4904_v50 }
 0x197   : > { %4884 = vst [vmem:[#allocation68_spill] sm:$0xff] %v3361_v4 }
 0x19d   : > { %v3354_v5 = vpop.xlane.xlu0 %1838 }
 0x19e   : > { %4883 = vst [vmem:[#allocation67_spill] sm:$0xff] %v3354_v5  ;;  %v1885_v29 = vsub.f32 %v3234_v42, %v3354_v5  ;;  %v4899_v42 = vld [vmem:[#allocation7_spill] sm:$0xff]  ;;  %v4927_v5 = vld [vmem:[#allocation24_spill] sm:$0xff] }
 0x19f   : > { %v3449_v48 = vmul.f32 %v3165_v58, %v4899_v42  ;;  %v3461_v56 = vmul.f32 %v3167_v7, %v4899_v42 }
 0x1a0   : > { %v1920_v40 = vmul.f32 1.442695, %v1885_v29  ;;  %v4907_v29 = vld [vmem:[#allocation22_spill] sm:$0xff] }
 0x1a2   : > { %2582 = vpow2.f32 %v1920_v40  ;;  %v884_v40 = vmul.f32 %v3149_v55, %v4907_v29 }
 0x1a3   : > { %1111 = vperm.xlu1 %2538, %v2884_v12  }
 0x1a7   : > { %1115 = vperm.xlu1 %2538, %v2892_v13   ;;  %v3372_v13 = vpop.permute.xlu1 %1517 }
 0x1ab   : > { %1119 = vperm.xlu1 %2538, %v2909_v15  }
 0x1ac   : > { %1513 = vperm.xlu0 %2533, %v2884_v12   ;;  %v3364_v2 = vpop.eup %2582  ;;  %v3378_v12 = vpop.permute.xlu1 %1525 }
 0x1ad   : > { %4885 = vst [vmem:[#allocation69_spill] sm:$0xff] %v3364_v2  ;;  %v2043_v30 = vpack.c.bf16 %v3364_v2, %v3361_v4 }
 0x1af   : > { %1159 = vperm.xlu1 %2538, %v2900_v14   ;;  %2106 = vmatprep.mubr.bf16.mxu0 %v2043_v30  ;;  %v885_v30 = vmul.f32 %v3151_v47, %v4907_v29  ;;  %v4910_v29 = vld [vmem:[#allocation13_spill] sm:$0xff] }
 0x1b0   : > { %1521 = vperm.xlu0 %2533, %v2909_v15   ;;  %v3382_v14 = vpop.permute.xlu1 %1561 }
 0x1b3   : > { %1163 = vperm.xlu1 %2538, %v2932_v18  }
 0x1b4   : > { %1565 = vperm.xlu0 %2533, %v2932_v18   ;;  %v3388_v15 = vpop.permute.xlu1 %1533 }
 0x1b7   : > { %1127 = vperm.xlu1 %2538, %v2954_v21  }
 0x1b8   : > { %1529 = vperm.xlu0 %2533, %v2954_v21  }
 0x1bb   : > { %1167 = vperm.xlu1 %2538, %v2914_v16   ;;  %v3392_v16 = vpop.permute.xlu1 %1569 }
 0x1bc   : > { %1573 = vperm.xlu0 %2533, %v2978_v24   ;;  %4886 = vst [vmem:[#allocation70_spill] sm:$0xff] %v3392_v16 }
 0x1bf   : > { %1171 = vperm.xlu1 %2538, %v2978_v24   ;;  %v3398_v18 = vpop.permute.xlu1 %1541 }
 0x1c0   : > { %1537 = vperm.xlu0 %2533, %v2989_v25  }
 0x1c3   : > { %1135 = vperm.xlu1 %2538, %v2989_v25  }
 0x1c4   : > { %1581 = vperm.xlu0 %2533, %v3008_v27  }
 0x1c7   : > { %1175 = vperm.xlu1 %2538, %v2925_v17   ;;  %v3402_v17 = vpop.permute.xlu1 %1577 }
 0x1c8   : > { %1545 = vperm.xlu0 %2533, %v3020_v28   ;;  %4887 = vst [vmem:[#allocation71_spill] sm:$0xff] %v3402_v17  ;;  %v4930_v17 = vld [vmem:[#allocation26_spill] sm:$0xff] }
 0x1c9   : > { %v3611_v8 = vmul.f32 %v3155_v54, %v4930_v17 }
 0x1cb   : > { %1179 = vperm.xlu1 %2538, %v3008_v27   ;;  %v3408_v21 = vpop.permute.xlu1 %1549  ;;  %4932 = vst [vmem:[#allocation20_spill] sm:$0xff] %v3611_v8 }
 0x1cc   : > { %1589 = vperm.xlu0 %2533, %v3038_v33   ;;  %4888 = vst [vmem:[#allocation72_spill] sm:$0xff] %v3408_v21 }
 0x1cf   : > { %1143 = vperm.xlu1 %2538, %v3020_v28   ;;  %v4897_v28 = vld [vmem:[#allocation5_spill] sm:$0xff] }
 0x1d0   : > { %1553 = vperm.xlu0 %2533, %v3053_v37   ;;  %4903 = vst [vmem:[#allocation5_spill] sm:$0xff] %v3469_v43 }
 0x1d3   : > { %1183 = vperm.xlu1 %2538, %v2940_v19   ;;  %v3413_v19 = vpop.permute.xlu1 %1585 }
 0x1d4   : > { %1597 = vperm.xlu0 %2533, %v3075_v44   ;;  %4889 = vst [vmem:[#allocation73_spill] sm:$0xff] %v3413_v19 }
 0x1d7   : > { %1187 = vperm.xlu1 %2538, %v3038_v33   ;;  %v3418_v24 = vpop.permute.xlu1 %1557  ;;  %v1286_v33 = vmul.f32 %v3165_v58, %v4897_v28 }
 0x1d8   : > { %1605 = vperm.xlu0 %2533, %v2967_v23   ;;  %4890 = vst [vmem:[#allocation74_spill] sm:$0xff] %v3418_v24  ;;  %v4916_v24 = vld [vmem:[#allocation18_spill] sm:$0xff] }
 0x1db   : > { %1151 = vperm.xlu1 %2538, %v3053_v37   ;;  %v1287_v37 = vmul.f32 %v3167_v7, %v4897_v28  ;;  %v3485_v28 = vmul.f32 %v3155_v54, %v4906_v34  ;;  %v883_v34 = vmul.f32 %v3151_v47, %v4909_v41  ;;  %v980_v41 = vadd.f32 %v884_v40, %v578_v32 }
 0x1dc   : > { %1621 = vperm.xlu0 %2533, %v3285_v38   ;;  %v3539_v32 = vmul.f32 %v3153_v39, %v4916_v24  ;;  %v889_v40 = vmul.f32 %v3151_v47, %v3203_v62 }
 0x1dd   : > { %v3563_v19 = vadd.f32 %v1286_v33, %v980_v41  ;;  %v887_v33 = vmul.f32 %v3151_v47, %v3191_v60 }
 0x1df   : > { %1191 = vperm.xlu1 %2538, %v2959_v22   ;;  %v3422_v22 = vpop.permute.xlu1 %1593 }
 0x1e0   : > { %2540 = vset.pattern.permute.xlu0 %v4870_v45  ;;  %4891 = vst [vmem:[#allocation75_spill] sm:$0xff] %v3422_v22  ;;  %v583_v45 = vmul.f32 %v3155_v54, %v4910_v29 }
 0x1e1   : > { %1155 = vperm.xlu0 %2540, %v2947_v20   ;;  %v4892_v20 = vmov 3  }
 0x1e3   : > { %1195 = vperm.xlu1 %2538, %v3075_v44   ;;  %v3427_v25 = vpop.permute.xlu1 %1601  ;;  %v4898_v44 = vld [vmem:[#allocation6_spill] sm:$0xff] }
 0x1e4   : > { %4893 = vst [vmem:[#allocation76_spill] sm:$0xff] %v3427_v25 }
 0x1e5   : > { %1199 = vperm.xlu0 %2540, %v3092_v49   ;;  %v3441_v49 = vmul.f32 %v3165_v58, %v4898_v44 }
 0x1e7   : > { %1203 = vperm.xlu1 %2538, %v2967_v23   ;;  %v3429_v23 = vpop.permute.xlu1 %1609 }
 0x1e8   : > { %4894 = vst [vmem:[#allocation77_spill] sm:$0xff] %v3429_v23  ;;  %v4912_v23 = vld [vmem:[#allocation14_spill] sm:$0xff] }
 0x1e9   : > { %1207 = vperm.xlu0 %2540, %v3003_v26  }
 0x1eb   : > { %1211 = vperm.xlu1 %2538, %v3118_v57   ;;  %v3431_v26 = vpop.permute.xlu1 %1613  ;;  %v3445_v57 = vmul.f32 %v3167_v7, %v4898_v44  ;;  %v4908_v44 = vld [vmem:[#allocation11_spill] sm:$0xff] }
 0x1ec   : > { %4895 = vst [vmem:[#allocation78_spill] sm:$0xff] %v3431_v26  ;;  %v3489_v42 = vmul.f32 %v3153_v39, %v4908_v44 }
 0x1ed   : > { %1215 = vperm.xlu0 %2540, %v3276_v10  }
 0x1ef   : > { %1219 = vperm.xlu1 %2538, %v3285_v38   ;;  %v3433_v27 = vpop.permute.xlu1 %505 }
 0x1f0   : > { %4896 = vst [vmem:[#allocation79_spill] sm:$0xff] %v3433_v27 }
 0x1f3   : > { %2539 = vset.pattern.permute.xlu1 %v4892_v20  ;;  %v3473_v3 = vpop.permute.xlu1 %510  ;;  %v582_v20 = vmul.f32 %v3153_v39, %v4910_v29  ;;  %v981_v29 = vadd.f32 %v885_v30, %v579_v9  ;;  %v888_v9 = vmul.f32 %v3149_v55, %v3203_v62  ;;  %v3547_v30 = vmul.f32 %v3155_v54, %v4916_v24 }
 0x1f4   : > { %1617 = vperm.xlu1 %2539, %v3276_v10   ;;  %v4900_v10 = vld [vmem:[#allocation9_spill] sm:$0xff]  ;;  %4905 = vst [vmem:[#allocation6_spill] sm:$0xff] %v3473_v3 }
 0x1f5   : > { %v572_v38 = vmul.f32 %v3153_v39, %v4900_v10  ;;  %v573_v1 = vmul.f32 %v3155_v54, %v4900_v10  ;;  %v3493_v10 = vmul.f32 %v3155_v54, %v4908_v44  ;;  %v4911_v3 = vld [vmem:[#allocation17_spill] sm:$0xff]  ;;  %v3565_v24 = vadd.f32 %v1287_v37, %v981_v29 }
 0x1f6   : > { %v576_v44 = vmul.f32 %v3153_v39, %v4911_v3  ;;  %v577_v27 = vmul.f32 %v3155_v54, %v4911_v3  ;;  %v4914_v3 = vld [vmem:[#allocation29_spill] sm:$0xff]  ;;  %v984_v41 = vadd.f32 %v888_v9, %v582_v20  ;;  %v985_v37 = vadd.f32 %v889_v40, %v583_v45  ;;  %v4928_v20 = vld [vmem:[#allocation31_spill] sm:$0xff] }
 0x1f7   : > { %v3497_v50 = vadd.f32 %v878_v46, %v572_v38  ;;  %v3513_v38 = vmul.f32 %v3153_v39, %v4912_v23  ;;  %v4913_v46 = vld [vmem:[#allocation16_spill] sm:$0xff]  ;;  %v904_v25 = vmul.f32 %v3149_v55, %v4914_v3  ;;  %v905_v4 = vmul.f32 %v3151_v47, %v4914_v3 }
 0x1f8   : > { %2541 = vset.pattern.permute.xlu1 %v4865_v53  ;;  %v3499_v53 = vadd.f32 %v879_v51, %v573_v1  ;;  %v3517_v1 = vmul.f32 %v3155_v54, %v4912_v23  ;;  %v3521_v51 = vmul.f32 %v3153_v39, %v4913_v46  ;;  %v3523_v26 = vadd.f32 %v882_v6, %v576_v44  ;;  %v3533_v23 = vpop.permute.xlu1 %813  ;;  %v4917_v6 = vld [vmem:[#allocation19_spill] sm:$0xff] }
 0x1f9   : > { %v3527_v2 = vmul.f32 %v3155_v54, %v4913_v46  ;;  %4915 = vst [vmem:[#allocation7_spill] sm:$0xff] %v3533_v23  ;;  %v3535_v22 = vadd.f32 %v883_v34, %v577_v27  ;;  %v3551_v44 = vmul.f32 %v3153_v39, %v4917_v6  ;;  %v4918_v27 = vld [vmem:[#allocation25_spill] sm:$0xff]  ;;  %v3559_v3 = vmul.f32 %v3155_v54, %v4917_v6 }
 0x1fa   : > { %v598_v34 = vmul.f32 %v3153_v39, %v4918_v27  ;;  %v599_v46 = vmul.f32 %v3155_v54, %v4918_v27  ;;  %v4919_v23 = vld [vmem:[#allocation21_spill] sm:$0xff]  ;;  %v886_v27 = vmul.f32 %v3149_v55, %v3191_v60  ;;  %v3577_v6 = vmul.f32 %v3153_v39, %v4922_v31 }
 0x1fb   : > { %v608_v62 = vmul.f32 %v3153_v39, %v4919_v23  ;;  %v609_v11 = vmul.f32 %v3155_v54, %v4919_v23  ;;  %v3583_v29 = vmul.f32 %v3155_v54, %v4922_v31  ;;  %v4925_v23 = vld [vmem:[#allocation30_spill] sm:$0xff]  ;;  %v612_v60 = vmul.f32 %v3153_v39, %v4927_v5 }
 0x1fc   : > { %v3569_v59 = vadd.f32 %v904_v25, %v598_v34  ;;  %v3571_v35 = vadd.f32 %v905_v4, %v599_v46  ;;  %4923 = vst [vmem:[#allocation8_spill] sm:$0xff] %v3577_v6  ;;  %v580_v4 = vmul.f32 %v3153_v39, %v3179_v52  ;;  %v581_v25 = vmul.f32 %v3155_v54, %v3179_v52  ;;  %v3591_v46 = vpop.permute.xlu1 %817 }
 0x1fd   : > { %4924 = vst [vmem:[#allocation10_spill] sm:$0xff] %v3583_v29  ;;  %v880_v34 = vmul.f32 %v3149_v55, %v4925_v23  ;;  %4926 = vst [vmem:[#allocation12_spill] sm:$0xff] %v3591_v46  ;;  %v881_v45 = vmul.f32 %v3151_v47, %v4925_v23  ;;  %v902_v31 = vmul.f32 %v3149_v55, %v4928_v20  ;;  %v4934_v29 = vld [vmem:[#allocation36_spill] sm:$0xff] }
 0x1fe   : > { %4920 = vst [vmem:[#allocation9_spill] sm:$0xff] %v3569_v59  ;;  %4921 = vst [vmem:[#allocation15_spill] sm:$0xff] %v3571_v35  ;;  %v903_v9 = vmul.f32 %v3151_v47, %v4928_v20  ;;  %v613_v52 = vmul.f32 %v3155_v54, %v4927_v5  ;;  %v3603_v40 = vadd.f32 %v886_v27, %v580_v4  ;;  %v4944_v59 = vld [vmem:[#allocation40_spill] sm:$0xff] }
 0x1ff   : > { %v3607_v46 = vmul.f32 %v3153_v39, %v4930_v17  ;;  %v3613_v23 = vadd.f32 %v887_v33, %v581_v25  ;;  %v602_v6 = vmul.f32 %v3153_v39, %v4934_v29  ;;  %v3618_v20 = vadd.f32 %v3441_v49, %v984_v41 }
 0x200   : > { %4929 = vst [vmem:[#allocation22_spill] sm:$0xff] %v3603_v40  ;;  %v3621_v5 = vadd.f32 %v3445_v57, %v985_v37  ;;  %v976_v27 = vadd.f32 %v880_v34, %v574_v61  ;;  %v603_v4 = vmul.f32 %v3155_v54, %v4934_v29  ;;  %v977_v25 = vadd.f32 %v881_v45, %v3485_v28  ;;  %v4937_v61 = vld [vmem:[#allocation43_spill] sm:$0xff]  ;;  %v4938_v37 = vld [vmem:[#allocation32_spill] sm:$0xff] }
 0x201   : > { %4931 = vst [vmem:[#allocation11_spill] sm:$0xff] %v3607_v46  ;;  %4933 = vst [vmem:[#allocation13_spill] sm:$0xff] %v3613_v23  ;;  %v4935_v46 = vld [vmem:[#allocation39_spill] sm:$0xff]  ;;  %v3633_v49 = vadd.f32 %v902_v31, %v3489_v42  ;;  %v3636_v57 = vadd.f32 %v903_v9, %v3493_v10  ;;  %v892_v41 = vmul.f32 %v3149_v55, %v4937_v61  ;;  %v4940_v10 = vld [vmem:[#allocation42_spill] sm:$0xff] }
 0x202   : > { %v908_v16 = vmul.f32 %v3149_v55, %v4935_v46  ;;  %v909_v17 = vmul.f32 %v3151_v47, %v4935_v46  ;;  %v906_v29 = vmul.f32 %v3149_v55, %v4938_v37  ;;  %v907_v34 = vmul.f32 %v3151_v47, %v4938_v37  ;;  %v4939_v46 = vld [vmem:[#allocation34_spill] sm:$0xff]  ;;  %v4941_v9 = vld [vmem:[#allocation35_spill] sm:$0xff] }
 0x203   : > { %v910_v8 = vmul.f32 %v3149_v55, %v4939_v46  ;;  %v893_v28 = vmul.f32 %v3151_v47, %v4937_v61  ;;  %v911_v42 = vmul.f32 %v3151_v47, %v4939_v46  ;;  %v890_v45 = vmul.f32 %v3149_v55, %v4940_v10  ;;  %v4943_v61 = vld [vmem:[#allocation37_spill] sm:$0xff] }
 0x204   : > { %v891_v31 = vmul.f32 %v3151_v47, %v4940_v10  ;;  %v3656_v23 = vadd.f32 %v908_v16, %v602_v6  ;;  %v3658_v37 = vadd.f32 %v909_v17, %v603_v4  ;;  %v915_v40 = vmul.f32 %v3151_v47, %v4941_v9 }
 0x205   : > { %v918_v43 = vmul.f32 %v3149_v55, %v4943_v61  ;;  %v584_v35 = vmul.f32 %v3153_v39, %v4944_v59  ;;  %v585_v10 = vmul.f32 %v3155_v54, %v4944_v59  ;;  %v988_v21 = vadd.f32 %v892_v41, %v3521_v51 }
 0x206   : > { %4942 = vst [vmem:[#allocation14_spill] sm:$0xff] %v3658_v37  ;;  %v919_v16 = vmul.f32 %v3151_v47, %v4943_v61  ;;  %v3672_v6 = vadd.f32 %v906_v29, %v3513_v38  ;;  %v3675_v4 = vadd.f32 %v907_v34, %v3517_v1  ;;  %v3678_v17 = vadd.f32 %v910_v8, %v3539_v32 }
 0x207   : > { %v3682_v37 = vadd.f32 %v911_v42, %v3547_v30  ;;  %v3684_v59 = vadd.f32 %v890_v45, %v584_v35  ;;  %v3686_v51 = vadd.f32 %v891_v31, %v585_v10  ;;  %v3690_v61 = vadd.f32 %v915_v40, %v609_v11 }
 0x208   : > { %v3692_v38 = vadd.f32 %v918_v43, %v612_v60  ;;  %v3698_v29 = vadd.f32 %v919_v16, %v613_v52  ;;  %v1390_v35 = vadd.f32 %v3449_v48, %v988_v21  ;;  %v4946_v43 = vld [vmem:[#allocation48_spill] sm:$0xff]  ;;  %v1688_v40 = vmul.f32 %v3181_v63, %v3378_v12 }
 0x209   : > { %v896_v60 = vmul.f32 %v3149_v55, %v4946_v43  ;;  %v897_v52 = vmul.f32 %v3151_v47, %v4946_v43  ;;  %v1689_v21 = vmul.f32 %v3183_v36, %v3378_v12  ;;  %v1684_v42 = vmul.f32 %v3181_v63, %v3372_v13 }
 0x20a   : > { %v1685_v45 = vmul.f32 %v3183_v36, %v3372_v13 }
 0x21f   : > { %v3629_v33 = vpop.xlane.xlu1 %1841 }
 0x220   : > { %4936 = vst [vmem:[#allocation17_spill] sm:$0xff] %v3629_v33  ;;  %v914_v33 = vmul.f32 %v3149_v55, %v4941_v9  ;;  %v989_v9 = vadd.f32 %v893_v28, %v3527_v2 }
 0x222   : > { %v3688_v41 = vadd.f32 %v914_v33, %v608_v62  ;;  %v4945_v33 = vld [vmem:[#allocation44_spill] sm:$0xff]  ;;  %v1391_v34 = vadd.f32 %v3461_v56, %v989_v9 }
 0x223   : > { %v1112_v46 = vpop.permute.xlu1 %1111  ;;  %v3694_v1 = vpop.xlane.xlu0 %1844  ;;  %v3705_v11 = vmul.f32 %v3153_v39, %v4945_v33 }
 0x224   : > { %v1280_v8 = vmul.f32 %v3165_v58, %v1112_v46  ;;  %v1281_v32 = vmul.f32 %v3167_v7, %v1112_v46 }
 0x226   : > { %v1376_v31 = vadd.f32 %v1280_v8, %v3497_v50  ;;  %v1377_v46 = vadd.f32 %v1281_v32, %v3499_v53  ;;  %v3735_v53 = vadd.f32 %v1689_v21, %v3565_v24  ;;  %v1692_v8 = vmul.f32 %v3181_v63, %v3388_v15 }
 0x227   : > { %v1116_v2 = vpop.permute.xlu1 %1115 }
 0x228   : > { %v1282_v30 = vmul.f32 %v3165_v58, %v1116_v2  ;;  %v1283_v62 = vmul.f32 %v3167_v7, %v1116_v2  ;;  %v3728_v2 = vadd.f32 %v1688_v40, %v3563_v19  ;;  %v1696_v19 = vmul.f32 %v3181_v63, %v3398_v18 }
 0x22a   : > { %v1378_v48 = vadd.f32 %v1282_v30, %v976_v27  ;;  %v1379_v28 = vadd.f32 %v1283_v62, %v977_v25  ;;  %v992_v25 = vadd.f32 %v896_v60, %v3551_v44  ;;  %v1693_v44 = vmul.f32 %v3183_v36, %v3388_v15  ;;  %v4947_v15 = vld [vmem:[#allocation45_spill] sm:$0xff] }
 0x22b   : > { %v1514_v10 = vpop.permute.xlu0 %1513  ;;  %v1120_v56 = vpop.permute.xlu1 %1119  ;;  %v1697_v62 = vmul.f32 %v3183_v36, %v3398_v18 }
 0x22c   : > { %v1682_v16 = vmul.f32 %v3181_v63, %v1514_v10  ;;  %v1683_v9 = vmul.f32 %v3183_v36, %v1514_v10  ;;  %v1284_v12 = vmul.f32 %v3165_v58, %v1120_v56  ;;  %v1285_v27 = vmul.f32 %v3167_v7, %v1120_v56 }
 0x22d   : > { %v3730_v13 = vadd.f32 %v1684_v42, %v1378_v48  ;;  %v3732_v50 = vadd.f32 %v1685_v45, %v1379_v28  ;;  %v3757_v42 = vmul.f32 %v3149_v55, %v4947_v15  ;;  %v3773_v56 = vadd.f32 %v1692_v8, %v3618_v20 }
 0x22e   : > { %v3739_v32 = vadd.f32 %v1682_v16, %v1376_v31  ;;  %v3741_v30 = vadd.f32 %v1683_v9, %v1377_v46  ;;  %v1380_v40 = vadd.f32 %v1284_v12, %v3523_v26  ;;  %v1381_v21 = vadd.f32 %v1285_v27, %v3535_v22 }
 0x22f   : > { %v1522_v43 = vpop.permute.xlu0 %1521  ;;  %v1160_v60 = vpop.permute.xlu1 %1159  ;;  %v1849_v24 = vmax.f32 %v3730_v13, %v3732_v50  ;;  %v3765_v26 = vmul.f32 %v3151_v47, %v4947_v15  ;;  %v993_v22 = vadd.f32 %v897_v52, %v3559_v3  ;;  %4950 = vst [vmem:[#allocation18_spill] sm:$0xff] %v3773_v56  ;;  %v3776_v16 = vadd.f32 %v1693_v44, %v3621_v5  ;;  %v4954_v44 = vld [vmem:[#allocation72_spill] sm:$0xff] }
 0x230   : > { %v1686_v48 = vmul.f32 %v3181_v63, %v1522_v43  ;;  %v1687_v28 = vmul.f32 %v3183_v36, %v1522_v43  ;;  %v1304_v45 = vmul.f32 %v3165_v58, %v1160_v60  ;;  %v1305_v18 = vmul.f32 %v3167_v7, %v1160_v60 }
 0x231   : > { %1850 = vmax.xlane.f32.xlu0 %v1849_v24  ;;  %v1846_v31 = vmax.f32 %v3739_v32, %v3741_v30  ;;  %4951 = vst [vmem:[#allocation19_spill] sm:$0xff] %v3776_v16  ;;  %v1394_v9 = vadd.f32 %v3465_v0, %v992_v25  ;;  %v1855_v43 = vmax.f32 %v3728_v2, %v3735_v53  ;;  %v4956_v24 = vld [vmem:[#allocation9_spill] sm:$0xff] }
 0x232   : > { %v3768_v46 = vadd.f32 %v1686_v48, %v1380_v40  ;;  %v3770_v10 = vadd.f32 %v1687_v28, %v1381_v21  ;;  %v3781_v60 = vadd.f32 %v1696_v19, %v1390_v35  ;;  %v3783_v3 = vadd.f32 %v1697_v62, %v1391_v34  ;;  %v4955_v19 = vld [vmem:[#allocation15_spill] sm:$0xff] }
 0x233   : > { %1847 = vmax.xlane.f32.xlu1 %v1846_v31  ;;  %v1566_v12 = vpop.permute.xlu0 %1565  ;;  %v1164_v27 = vpop.permute.xlu1 %1163  ;;  %v1706_v5 = vmul.f32 %v3181_v63, %v3382_v14  ;;  %v1401_v25 = vadd.f32 %v1305_v18, %v3636_v57  ;;  %v1400_v8 = vadd.f32 %v1304_v45, %v3633_v49  ;;  %v1700_v35 = vmul.f32 %v3181_v63, %v4954_v44  ;;  %v4957_v45 = vld [vmem:[#allocation5_spill] sm:$0xff] }
 0x234   : > { %4948 = vst [vmem:[#allocation16_spill] sm:$0xff] %v3768_v46  ;;  %4949 = vst [vmem:[#allocation29_spill] sm:$0xff] %v3770_v10  ;;  %v1306_v52 = vmul.f32 %v3165_v58, %v1164_v27  ;;  %v1307_v20 = vmul.f32 %v3167_v7, %v1164_v27  ;;  %v1852_v0 = vmax.f32 %v3768_v46, %v3770_v10 }
 0x235   : > { %4952 = vst [vmem:[#allocation25_spill] sm:$0xff] %v3781_v60  ;;  %4953 = vst [vmem:[#allocation21_spill] sm:$0xff] %v3783_v3  ;;  %1856 = vmax.xlane.f32.xlu0 %v1855_v43  ;;  %v1701_v34 = vmul.f32 %v3183_v36, %v4954_v44  ;;  %v1707_v21 = vmul.f32 %v3183_v36, %v3382_v14  ;;  %v1708_v48 = vmul.f32 %v3181_v63, %v1566_v12 }
 0x236   : > { %v1403_v62 = vadd.f32 %v1307_v20, %v4955_v19  ;;  %v1402_v40 = vadd.f32 %v1306_v52, %v4956_v24  ;;  %v1709_v28 = vmul.f32 %v3183_v36, %v1566_v12  ;;  %v1861_v15 = vmax.f32 %v3773_v56, %v3776_v16  ;;  %v4960_v19 = vld [vmem:[#allocation22_spill] sm:$0xff]  ;;  %v4961_v16 = vld [vmem:[#allocation13_spill] sm:$0xff] }
 0x237   : > { %1853 = vmax.xlane.f32.xlu1 %v1852_v0  ;;  %v1530_v57 = vpop.permute.xlu0 %1529  ;;  %v1128_v49 = vpop.permute.xlu1 %1127  ;;  %v1395_v18 = vadd.f32 %v4957_v45, %v993_v22  ;;  %v1867_v43 = vmax.f32 %v3781_v60, %v3783_v3  ;;  %v1803_v14 = vadd.f32 %v1707_v21, %v1401_v25  ;;  %v1802_v20 = vadd.f32 %v1706_v5, %v1400_v8  ;;  %v4962_v25 = vld [vmem:[#allocation47_spill] sm:$0xff] }
 0x238   : > { %v1288_v31 = vmul.f32 %v3165_v58, %v1128_v49  ;;  %v1289_v27 = vmul.f32 %v3167_v7, %v1128_v49  ;;  %v1805_v52 = vadd.f32 %v1709_v28, %v1403_v62  ;;  %v1804_v12 = vadd.f32 %v1708_v48, %v1402_v40  ;;  %v4965_v40 = vld [vmem:[#allocation38_spill] sm:$0xff] }
 0x239   : > { %1862 = vmax.xlane.f32.xlu0 %v1861_v15  ;;  %v3810_v0 = vadd.f32 %v1700_v35, %v1394_v9  ;;  %v3812_v44 = vadd.f32 %v1701_v34, %v1395_v18  ;;  %v1690_v45 = vmul.f32 %v3181_v63, %v1530_v57  ;;  %v1691_v49 = vmul.f32 %v3183_v36, %v1530_v57  ;;  %v4966_v48 = vld [vmem:[#allocation46_spill] sm:$0xff] }
 0x23a   : > { %v1384_v24 = vadd.f32 %v1288_v31, %v4960_v19  ;;  %v1385_v22 = vadd.f32 %v1289_v27, %v4961_v16  ;;  %v2059_v3 = vpack.c.bf16 %v1805_v52, %v1803_v14  ;;  %v2058_v15 = vpack.c.bf16 %v1804_v12, %v1802_v20 }
 0x23b   : > { %4958 = vst [vmem:[#allocation23_spill] sm:$0xff] %v3810_v0  ;;  %4959 = vst [vmem:[#allocation30_spill] sm:$0xff] %v3812_v44  ;;  %v1574_v56 = vpop.permute.xlu0 %1573  ;;  %v1168_v10 = vpop.permute.xlu1 %1167  ;;  %v607_v5 = vmul.f32 %v3155_v54, %v4945_v33  ;;  %v894_v9 = vmul.f32 %v3149_v55, %v4962_v25  ;;  %v895_v8 = vmul.f32 %v3151_v47, %v4962_v25  ;;  %v4970_v25 = vld [vmem:[#allocation70_spill] sm:$0xff] }
 0x23c   : > { %v1308_v35 = vmul.f32 %v3165_v58, %v1168_v10  ;;  %v1309_v16 = vmul.f32 %v3167_v7, %v1168_v10  ;;  %2074 = vmatprep.subr.bf16.mxu0 %v2059_v3  ;;  %v3826_v34 = vadd.f32 %v1690_v45, %v1384_v24  ;;  %v3828_v62 = vadd.f32 %v1691_v49, %v1385_v22  ;;  %v4968_v24 = vld [vmem:[#allocation50_spill] sm:$0xff] }
 0x23d   : > { %1868 = vmax.xlane.f32.xlu0 %v1867_v43  ;;  %v3832_v21 = vmul.f32 %v3149_v55, %v4965_v40  ;;  %v3836_v33 = vmul.f32 %v3151_v47, %v4965_v40  ;;  %v588_v28 = vmul.f32 %v3153_v39, %v4966_v48  ;;  %v589_v10 = vmul.f32 %v3155_v54, %v4966_v48  ;;  %v4971_v40 = vld [vmem:[#allocation52_spill] sm:$0xff] }
 0x23e   : > { %4963 = vst [vmem:[#allocation24_spill] sm:$0xff] %v3826_v34  ;;  %4964 = vst [vmem:[#allocation31_spill] sm:$0xff] %v3828_v62  ;;  %2075 = vmatpush1.bf16.xpose.msra.mxu0 %v2058_v15  ;;  %v3844_v3 = vadd.f32 %v3757_v42, %v3705_v11  ;;  %v3847_v57 = vadd.f32 %v3765_v26, %v607_v5  ;;  %v1873_v27 = vmax.f32 %v3810_v0, %v3812_v44  ;;  %v4967_v42 = vld [vmem:[#allocation49_spill] sm:$0xff]  ;;  %v4969_v15 = vld [vmem:[#allocation14_spill] sm:$0xff] }
 0x23f   : > { %v1538_v18 = vpop.permute.xlu0 %1537  ;;  %v1172_v31 = vpop.permute.xlu1 %1171  ;;  %v1858_v43 = vmax.f32 %v3826_v34, %v3828_v62  ;;  %v3853_v14 = vadd.f32 %v894_v9, %v588_v28  ;;  %v3855_v52 = vadd.f32 %v895_v8, %v589_v10  ;;  %v610_v26 = vmul.f32 %v3153_v39, %v4967_v42 }
 0x240   : > { %v1310_v20 = vmul.f32 %v3165_v58, %v1172_v31  ;;  %v1311_v11 = vmul.f32 %v3167_v7, %v1172_v31  ;;  %v1404_v12 = vadd.f32 %v1308_v35, %v3672_v6  ;;  %v1405_v19 = vadd.f32 %v1309_v16, %v3675_v4 }
 0x241   : > { %1874 = vmax.xlane.f32.xlu0 %v1873_v27  ;;  %1859 = vmax.xlane.f32.xlu1 %v1858_v43  ;;  %v916_v22 = vmul.f32 %v3149_v55, %v4968_v24  ;;  %v917_v45 = vmul.f32 %v3151_v47, %v4968_v24  ;;  %v1710_v9 = vmul.f32 %v3181_v63, %v4970_v25 }
 0x242   : > { %v1406_v49 = vadd.f32 %v1310_v20, %v3656_v23  ;;  %v1407_v5 = vadd.f32 %v1311_v11, %v4969_v15  ;;  %v1711_v6 = vmul.f32 %v3183_v36, %v4970_v25  ;;  %v1712_v4 = vmul.f32 %v3181_v63, %v1574_v56  ;;  %v4972_v11 = vld [vmem:[#allocation53_spill] sm:$0xff] }
 0x243   : > { %v1713_v8 = vmul.f32 %v3183_v36, %v1574_v56  ;;  %v1582_v35 = vpop.permute.xlu0 %1581  ;;  %v1136_v16 = vpop.permute.xlu1 %1135  ;;  %v898_v48 = vmul.f32 %v3149_v55, %v4971_v40  ;;  %v899_v23 = vmul.f32 %v3151_v47, %v4971_v40  ;;  %v1806_v43 = vadd.f32 %v1710_v9, %v1404_v12 }
 0x244   : > { %v1292_v28 = vmul.f32 %v3165_v58, %v1136_v16  ;;  %v1293_v10 = vmul.f32 %v3167_v7, %v1136_v16  ;;  %v1807_v31 = vadd.f32 %v1711_v6, %v1405_v19  ;;  %v1808_v20 = vadd.f32 %v1712_v4, %v1406_v49  ;;  %v4973_v49 = vld [vmem:[#allocation51_spill] sm:$0xff] }
 0x245   : > { %v1809_v27 = vadd.f32 %v1713_v8, %v1407_v5  ;;  %v900_v24 = vmul.f32 %v3149_v55, %v4972_v11  ;;  %v901_v56 = vmul.f32 %v3151_v47, %v4972_v11  ;;  %v1694_v40 = vmul.f32 %v3181_v63, %v1538_v18  ;;  %v4978_v11 = vld [vmem:[#allocation10_spill] sm:$0xff] }
 0x246   : > { %v1388_v15 = vadd.f32 %v1292_v28, %v3684_v59  ;;  %v1389_v25 = vadd.f32 %v1293_v10, %v3686_v51  ;;  %v1695_v62 = vmul.f32 %v3183_v36, %v1538_v18  ;;  %v2060_v5 = vpack.c.bf16 %v1808_v20, %v1806_v43  ;;  %v4974_v59 = vld [vmem:[#allocation55_spill] sm:$0xff]  ;;  %v4977_v43 = vld [vmem:[#allocation8_spill] sm:$0xff] }
 0x247   : > { %v1546_v34 = vpop.permute.xlu0 %1545  ;;  %v1176_v16 = vpop.permute.xlu1 %1175  ;;  %v2061_v19 = vpack.c.bf16 %v1809_v27, %v1807_v31  ;;  %v611_v12 = vmul.f32 %v3155_v54, %v4967_v42  ;;  %v592_v9 = vmul.f32 %v3153_v39, %v4973_v49  ;;  %v593_v6 = vmul.f32 %v3155_v54, %v4973_v49 }
 0x248   : > { %v920_v51 = vmul.f32 %v3149_v55, %v4974_v59  ;;  %v1312_v4 = vmul.f32 %v3165_v58, %v1176_v16  ;;  %v1313_v18 = vmul.f32 %v3167_v7, %v1176_v16  ;;  %v3899_v8 = vadd.f32 %v1694_v40, %v1388_v15  ;;  %v4979_v16 = vld [vmem:[#allocation54_spill] sm:$0xff] }
 0x249   : > { %2076 = vmatprep.subr.bf16.mxu0 %v2061_v19  ;;  %v3901_v28 = vadd.f32 %v1695_v62, %v1389_v25  ;;  %v3903_v10 = vadd.f32 %v916_v22, %v610_v26  ;;  %v3905_v42 = vadd.f32 %v917_v45, %v611_v12  ;;  %v3907_v31 = vadd.f32 %v898_v48, %v592_v9  ;;  %v4980_v48 = vld [vmem:[#allocation62_spill] sm:$0xff]  ;;  %v4982_v9 = vld [vmem:[#allocation57_spill] sm:$0xff] }
 0x24a   : > { %4975 = vst [vmem:[#allocation26_spill] sm:$0xff] %v3899_v8  ;;  %v3909_v27 = vadd.f32 %v899_v23, %v593_v6  ;;  %2077 = vmatpush1.bf16.xpose.msra.mxu0 %v2060_v5  ;;  %v3912_v20 = vadd.f32 %v900_v24, %v4977_v43  ;;  %v3915_v49 = vadd.f32 %v901_v56, %v4978_v11  ;;  %v4981_v23 = vld [vmem:[#allocation33_spill] sm:$0xff] }
 0x24b   : > { %4976 = vst [vmem:[#allocation36_spill] sm:$0xff] %v3901_v28  ;;  %v614_v15 = vmul.f32 %v3153_v39, %v4979_v16  ;;  %v3919_v62 = vpop.permute.xlu0 %1589  ;;  %v1180_v26 = vpop.permute.xlu1 %1179  ;;  %v1864_v22 = vmax.f32 %v3899_v8, %v3901_v28  ;;  %v615_v45 = vmul.f32 %v3155_v54, %v4979_v16  ;;  %v1882_v25 = vsub.f32 %v4981_v23, %v4980_v48  ;;  %v4985_v48 = vld [vmem:[#allocation41_spill] sm:$0xff]  ;;  %v4987_v8 = vld [vmem:[#allocation63_spill] sm:$0xff] }
 0x24c   : > { %v1314_v24 = vmul.f32 %v3165_v58, %v1180_v26  ;;  %v1315_v56 = vmul.f32 %v3167_v7, %v1180_v26  ;;  %v921_v40 = vmul.f32 %v3151_v47, %v4974_v59  ;;  %v1408_v5 = vadd.f32 %v1312_v4, %v3678_v17  ;;  %v4983_v26 = vld [vmem:[#allocation71_spill] sm:$0xff] }
 0x24d   : > { %v3931_v19 = vadd.f32 %v920_v51, %v614_v15  ;;  %v1409_v12 = vadd.f32 %v1313_v18, %v3682_v37  ;;  %1865 = vmax.xlane.f32.xlu1 %v1864_v22  ;;  %v922_v6 = vmul.f32 %v3149_v55, %v4982_v9  ;;  %v923_v43 = vmul.f32 %v3151_v47, %v4982_v9  ;;  %v4984_v22 = vld [vmem:[#allocation67_spill] sm:$0xff] }
 0x24e   : > { %v1410_v11 = vadd.f32 %v1314_v24, %v3844_v3  ;;  %v1411_v16 = vadd.f32 %v1315_v56, %v3847_v57  ;;  %v1714_v59 = vmul.f32 %v3181_v63, %v4983_v26  ;;  %v1715_v51 = vmul.f32 %v3183_v36, %v4983_v26  ;;  %v4986_v26 = vld [vmem:[#allocation17_spill] sm:$0xff] }
 0x24f   : > { %v1716_v17 = vmul.f32 %v3181_v63, %v1582_v35  ;;  %v1717_v37 = vmul.f32 %v3183_v36, %v1582_v35  ;;  %v3947_v4 = vpop.permute.xlu0 %1553  ;;  %v1144_v18 = vpop.permute.xlu1 %1143  ;;  %v1914_v15 = vmul.f32 1.442695, %v1882_v25  ;;  %v1884_v23 = vsub.f32 %v4985_v48, %v4984_v22  ;;  %v4988_v35 = vld [vmem:[#allocation64_spill] sm:$0xff] }
 0x250   : > { %v1296_v3 = vmul.f32 %v3165_v58, %v1144_v18  ;;  %v1297_v57 = vmul.f32 %v3167_v7, %v1144_v18  ;;  %v1811_v24 = vadd.f32 %v1715_v51, %v1409_v12  ;;  %v1810_v9 = vadd.f32 %v1714_v59, %v1408_v5  ;;  %v4990_v51 = vld [vmem:[#allocation58_spill] sm:$0xff] }
 0x251   : > { %v1813_v56 = vadd.f32 %v1717_v37, %v1411_v16  ;;  %v1812_v28 = vadd.f32 %v1716_v17, %v1410_v11  ;;  %v1886_v44 = vsub.f32 %v4987_v8, %v4986_v26  ;;  %v1887_v0 = vsub.f32 %v4988_v35, %v4986_v26  ;;  %v4989_v11 = vld [vmem:[#allocation56_spill] sm:$0xff] }
 0x252   : > { %v1392_v60 = vadd.f32 %v1296_v3, %v3853_v14  ;;  %v1393_v25 = vadd.f32 %v1297_v57, %v3855_v52  ;;  %v1698_v22 = vmul.f32 %v3181_v63, %v1546_v34  ;;  %v1699_v48 = vmul.f32 %v3183_v36, %v1546_v34 }
 0x253   : > { %v3961_v46 = vpop.permute.xlu0 %1597  ;;  %v1184_v12 = vpop.permute.xlu1 %1183  ;;  %v2063_v16 = vpack.c.bf16 %v1813_v56, %v1811_v24  ;;  %v2062_v5 = vpack.c.bf16 %v1812_v28, %v1810_v9  ;;  %v616_v59 = vmul.f32 %v3153_v39, %v4989_v11  ;;  %v617_v8 = vmul.f32 %v3155_v54, %v4989_v11 }
 0x254   : > { %v924_v14 = vmul.f32 %v3149_v55, %v4990_v51  ;;  %v1918_v17 = vmul.f32 1.442695, %v1884_v23  ;;  %v1316_v52 = vmul.f32 %v3165_v58, %v1184_v12  ;;  %v1317_v37 = vmul.f32 %v3167_v7, %v1184_v12 }
 0x255   : > { %2078 = vmatprep.subr.bf16.mxu0 %v2063_v16  ;;  %v3971_v34 = vadd.f32 %v1698_v22, %v1392_v60  ;;  %v3973_v18 = vadd.f32 %v1699_v48, %v1393_v25  ;;  %v3975_v28 = vadd.f32 %v921_v40, %v615_v45  ;;  %v3977_v3 = vadd.f32 %v922_v6, %v616_v59  ;;  %v4991_v45 = vld [vmem:[#allocation65_spill] sm:$0xff]  ;;  %v4992_v6 = vld [vmem:[#allocation66_spill] sm:$0xff]  ;;  %v4993_v25 = vld [vmem:[#allocation11_spill] sm:$0xff] }
 0x256   : > { %v3979_v57 = vadd.f32 %v923_v43, %v617_v8  ;;  %v1922_v24 = vmul.f32 1.442695, %v1886_v44  ;;  %2079 = vmatpush1.bf16.xpose.msra.mxu0 %v2062_v5  ;;  %v925_v23 = vmul.f32 %v3151_v47, %v4990_v51  ;;  %2584 = vpow2.f32 %v1914_v15  ;;  %v4994_v48 = vld [vmem:[#allocation73_spill] sm:$0xff] }
 0x257   : > { %v1924_v56 = vmul.f32 1.442695, %v1887_v0  ;;  %v3983_v9 = vpop.permute.xlu0 %1605  ;;  %v1188_v26 = vpop.permute.xlu1 %1187  ;;  %v1870_v60 = vmax.f32 %v3971_v34, %v3973_v18  ;;  %v1888_v40 = vsub.f32 %v4991_v45, %v3694_v1  ;;  %v1889_v43 = vsub.f32 %v4992_v6, %v3694_v1 }
 0x258   : > { %v1318_v44 = vmul.f32 %v3165_v58, %v1188_v26  ;;  %v1319_v35 = vmul.f32 %v3167_v7, %v1188_v26  ;;  %v3994_v22 = vadd.f32 %v924_v14, %v4993_v25  ;;  %2586 = vpow2.f32 %v1918_v17 }
 0x259   : > { %v1412_v0 = vadd.f32 %v1316_v52, %v3688_v41  ;;  %v1413_v15 = vadd.f32 %v1317_v37, %v3690_v61  ;;  %1871 = vmax.xlane.f32.xlu1 %v1870_v60  ;;  %v1718_v12 = vmul.f32 %v3181_v63, %v4994_v48  ;;  %2588 = vpow2.f32 %v1922_v24  ;;  %v4995_v60 = vld [vmem:[#allocation20_spill] sm:$0xff] }
 0x25a   : > { %v1414_v16 = vadd.f32 %v1318_v44, %v3903_v10  ;;  %v1415_v1 = vadd.f32 %v1319_v35, %v3905_v42  ;;  %v1719_v5 = vmul.f32 %v3183_v36, %v4994_v48  ;;  %2590 = vpow2.f32 %v1924_v56 }
 0x25b   : > { %v1720_v11 = vmul.f32 %v3181_v63, %v3919_v62  ;;  %v1721_v41 = vmul.f32 %v3183_v36, %v3919_v62  ;;  %v4008_v61 = vpop.permute.xlu0 %1621  ;;  %v1152_v59 = vpop.permute.xlu1 %1151  ;;  %v1926_v8 = vmul.f32 1.442695, %v1888_v40  ;;  %v1928_v51 = vmul.f32 1.442695, %v1889_v43  ;;  %v4996_v40 = vld [vmem:[#allocation59_spill] sm:$0xff] }
 0x25c   : > { %v1300_v14 = vmul.f32 %v3165_v58, %v1152_v59  ;;  %v1301_v10 = vmul.f32 %v3167_v7, %v1152_v59  ;;  %v1815_v42 = vadd.f32 %v1719_v5, %v1413_v15  ;;  %v1814_v52 = vadd.f32 %v1718_v12, %v1412_v0 }
 0x25d   : > { %v1817_v17 = vadd.f32 %v1721_v41, %v1415_v1  ;;  %v1816_v37 = vadd.f32 %v1720_v11, %v1414_v16  ;;  %v1702_v24 = vmul.f32 %v3181_v63, %v3947_v4  ;;  %v1703_v56 = vmul.f32 %v3183_v36, %v3947_v4  ;;  %v4998_v1 = vld [vmem:[#allocation74_spill] sm:$0xff] }
 0x25e   : > { %v1396_v62 = vadd.f32 %v1300_v14, %v3907_v31  ;;  %v1397_v26 = vadd.f32 %v1301_v10, %v3909_v27  ;;  %v1021_v45 = vadd.f32 %v925_v23, %v4995_v60  ;;  %v4021_v6 = vmul.f32 %v3155_v54, %v4996_v40  ;;  %v4997_v27 = vld [vmem:[#allocation61_spill] sm:$0xff] }
 0x25f   : > { %v1192_v43 = vpop.permute.xlu1 %1191  ;;  %v2065_v44 = vpack.c.bf16 %v1817_v17, %v1815_v42  ;;  %v2064_v35 = vpack.c.bf16 %v1816_v37, %v1814_v52  ;;  %v929_v23 = vmul.f32 %v3151_v47, %v4997_v27  ;;  %2592 = vpow2.f32 %v1926_v8  ;;  %v4999_v37 = vld [vmem:[#allocation75_spill] sm:$0xff] }
 0x260   : > { %v1320_v25 = vmul.f32 %v3165_v58, %v1192_v43  ;;  %v1321_v0 = vmul.f32 %v3167_v7, %v1192_v43  ;;  %v1156_v15 = vpop.permute.xlu0 %1155  ;;  %v4025_v48 = vadd.f32 %v1702_v24, %v1396_v62  ;;  %v4027_v4 = vadd.f32 %v1703_v56, %v1397_v26  ;;  %v4029_v31 = vpop.eup %2584  ;;  %v5000_v26 = vld [vmem:[#allocation68_spill] sm:$0xff] }
 0x261   : > { %v1302_v12 = vmul.f32 %v3165_v58, %v1156_v15  ;;  %v1303_v16 = vmul.f32 %v3167_v7, %v1156_v15  ;;  %2080 = vmatprep.subr.bf16.mxu0 %v2065_v44  ;;  %v1704_v5 = vmul.f32 %v3181_v63, %v4998_v1  ;;  %v1705_v11 = vmul.f32 %v3183_v36, %v4998_v1 }
 0x262   : > { %2594 = vpow2.f32 %v1928_v51  ;;  %2081 = vmatpush1.bf16.xpose.msra.mxu0 %v2064_v35  ;;  %v1876_v41 = vmax.f32 %v4025_v48, %v4027_v4  ;;  %v4041_v59 = vpop.eup %2586  ;;  %v1416_v8 = vadd.f32 %v1320_v25, %v3692_v38  ;;  %v1417_v14 = vadd.f32 %v1321_v0, %v3698_v29 }
 0x263   : > { %v1398_v10 = vadd.f32 %v1302_v12, %v3912_v20  ;;  %v1399_v42 = vadd.f32 %v1303_v16, %v3915_v49  ;;  %v1196_v17 = vpop.permute.xlu1 %1195  ;;  %v4047_v52 = vpop.eup %2588  ;;  %v1722_v51 = vmul.f32 %v3181_v63, %v4999_v37  ;;  %v1978_v38 = vadd.f32 %v4029_v31, %v5000_v26 }
 0x264   : > { %v1322_v24 = vmul.f32 %v3165_v58, %v1196_v17  ;;  %v1323_v56 = vmul.f32 %v3167_v7, %v1196_v17  ;;  %v1200_v62 = vpop.permute.xlu0 %1199  ;;  %1877 = vmax.xlane.f32.xlu1 %v1876_v41  ;;  %v4055_v29 = vpop.eup %2590  ;;  %v1723_v20 = vmul.f32 %v3183_v36, %v4999_v37  ;;  %v1724_v44 = vmul.f32 %v3181_v63, %v3961_v46  ;;  %v5002_v17 = vld [vmem:[#allocation60_spill] sm:$0xff] }
 0x265   : > { %v4059_v49 = vadd.f32 %v1704_v5, %v1398_v10  ;;  %v4061_v60 = vadd.f32 %v1705_v11, %v1399_v42  ;;  %v1325_v43 = vmul.f32 %v3167_v7, %v1200_v62  ;;  %v1725_v35 = vmul.f32 %v3183_v36, %v3961_v46 }
 0x266   : > { %v1418_v25 = vadd.f32 %v1322_v24, %v3931_v19  ;;  %v1419_v0 = vadd.f32 %v1323_v56, %v3975_v28  ;;  %v1819_v1 = vadd.f32 %v1723_v20, %v1417_v14  ;;  %v1818_v5 = vadd.f32 %v1722_v51, %v1416_v8  ;;  %v5003_v28 = vld [vmem:[#allocation76_spill] sm:$0xff] }
 0x267   : > { %5001 = vst [vmem:[#allocation39_spill] sm:$0xff] %v4061_v60  ;;  %v1421_v15 = vadd.f32 %v1325_v43, %v3979_v57  ;;  %v1204_v12 = vpop.permute.xlu1 %1203  ;;  %v1879_v16 = vmax.f32 %v4059_v49, %v4061_v60  ;;  %v623_v19 = vmul.f32 %v3155_v54, %v5002_v17  ;;  %v1727_v57 = vmul.f32 %v3183_v36, %v5003_v28 }
 0x268   : > { %v1326_v11 = vmul.f32 %v3165_v58, %v1204_v12  ;;  %v1327_v41 = vmul.f32 %v3167_v7, %v1204_v12  ;;  %v1208_v10 = vpop.permute.xlu0 %1207  ;;  %1979 = vadd.xlane.f32.xlu1 %v1978_v38  ;;  %v1821_v42 = vadd.f32 %v1725_v35, %v1419_v0  ;;  %v1820_v46 = vadd.f32 %v1724_v44, %v1418_v25  ;;  %v5004_v35 = vld [vmem:[#allocation69_spill] sm:$0xff] }
 0x269   : > { %v1729_v37 = vmul.f32 %v3183_v36, %v3983_v9  ;;  %1880 = vmax.xlane.f32.xlu0 %v1879_v16  ;;  %v1984_v8 = vadd.f32 %v4055_v29, %v4047_v52  ;;  %v1324_v14 = vmul.f32 %v3165_v58, %v1200_v62  ;;  %v4084_v26 = vpop.eup %2592  ;;  %v1025_v38 = vadd.f32 %v929_v23, %v623_v19 }
 0x26a   : > { %v1423_v51 = vadd.f32 %v1327_v41, %v1021_v45  ;;  %v2067_v24 = vpack.c.bf16 %v1821_v42, %v1819_v1  ;;  %v2066_v56 = vpack.c.bf16 %v1820_v46, %v1818_v5  ;;  %v1823_v20 = vadd.f32 %v1727_v57, %v1421_v15  ;;  %v5005_v42 = vld [vmem:[#allocation78_spill] sm:$0xff] }
 0x26b   : > { %v1329_v43 = vmul.f32 %v3167_v7, %v1208_v10  ;;  %v1212_v44 = vpop.permute.xlu1 %1211  ;;  %v1981_v25 = vadd.f32 %v4041_v59, %v5004_v35  ;;  %v1422_v12 = vadd.f32 %v1326_v11, %v3994_v22  ;;  %v620_v62 = vmul.f32 %v3153_v39, %v4996_v40 }
 0x26c   : > { %v4089_v0 = vpop.eup %2594  ;;  %v1331_v16 = vmul.f32 %v3167_v7, %v1212_v44  ;;  %1985 = vadd.xlane.f32.xlu1 %v1984_v8  ;;  %2082 = vmatprep.subr.bf16.mxu0 %v2067_v24  ;;  %v1825_v45 = vadd.f32 %v1729_v37, %v1423_v51  ;;  %v1023_v23 = vadd.f32 %v3836_v33, %v4021_v6  ;;  %v1216_v37 = vpop.permute.xlu0 %1215  ;;  %v5009_v51 = vld [vmem:[#allocation7_spill] sm:$0xff] }
 0x26d   : > { %v622_v15 = vmul.f32 %v3153_v39, %v5002_v17  ;;  %v928_v1 = vmul.f32 %v3149_v55, %v4997_v27  ;;  %1982 = vadd.xlane.f32.xlu0 %v1981_v25  ;;  %v1728_v22 = vmul.f32 %v3181_v63, %v3983_v9  ;;  %v1420_v5 = vadd.f32 %v1324_v14, %v3977_v3  ;;  %v5006_v17 = vld [vmem:[#allocation77_spill] sm:$0xff]  ;;  %v5007_v9 = vld [vmem:[#allocation79_spill] sm:$0xff] }
 0x26e   : > { %v1427_v11 = vadd.f32 %v1331_v16, %v1025_v38  ;;  %2083 = vmatpush1.bf16.xpose.msra.mxu0 %v2066_v56  ;;  %v2069_v41 = vpack.c.bf16 %v1825_v45, %v1823_v20  ;;  %v1726_v40 = vmul.f32 %v3181_v63, %v5003_v28  ;;  %v1733_v33 = vmul.f32 %v3183_v36, %v5005_v42  ;;  %v5008_v28 = vld [vmem:[#allocation6_spill] sm:$0xff]  ;;  %v5010_v56 = vld [vmem:[#allocation12_spill] sm:$0xff] }
 0x26f   : > { %v1425_v6 = vadd.f32 %v1329_v43, %v1023_v23  ;;  %v1220_v46 = vpop.permute.xlu1 %1219  ;;  %v1987_v27 = vadd.f32 %v4089_v0, %v4084_v26  ;;  %v1731_v19 = vmul.f32 %v3183_v36, %v5006_v17  ;;  %v625_v3 = vmul.f32 %v3155_v54, %v5007_v9 }
 0x270   : > { %v1330_v57 = vmul.f32 %v3165_v58, %v1212_v44  ;;  %2084 = vmatprep.subr.bf16.mxu0 %v2069_v41  ;;  %v1824_v8 = vadd.f32 %v1728_v22, %v1422_v12  ;;  %v627_v14 = vmul.f32 %v3155_v54, %v5008_v28  ;;  %v931_v24 = vmul.f32 %v3151_v47, %v5009_v51 }
 0x271   : > { %v933_v38 = vmul.f32 %v3151_v47, %v5010_v56  ;;  %1988 = vadd.xlane.f32.xlu0 %v1987_v27  ;;  %v1829_v20 = vadd.f32 %v1733_v33, %v1427_v11  ;;  %v1024_v43 = vadd.f32 %v928_v1, %v622_v15  ;;  %v1822_v35 = vadd.f32 %v1726_v40, %v1420_v5 }
 0x272   : > { %v1328_v25 = vmul.f32 %v3165_v58, %v1208_v10  ;;  %v1827_v16 = vadd.f32 %v1731_v19, %v1425_v6  ;;  %v1333_v44 = vmul.f32 %v3167_v7, %v1216_v37  ;;  %v1335_v12 = vmul.f32 %v3167_v7, %v1220_v46 }
 0x273   : > { %v1618_v45 = vpop.permute.xlu1 %1617  ;;  %v1022_v23 = vadd.f32 %v3832_v21, %v620_v62  ;;  %v1426_v22 = vadd.f32 %v1330_v57, %v1024_v43  ;;  %v2068_v41 = vpack.c.bf16 %v1824_v8, %v1822_v35  ;;  %v1027_v54 = vadd.f32 %v931_v24, %v625_v3 }
 0x274   : > { %v1029_v60 = vadd.f32 %v933_v38, %v627_v14  ;;  %v1735_v47 = vmul.f32 %v3183_v36, %v1618_v45  ;;  %v2071_v27 = vpack.c.bf16 %v1829_v20, %v1827_v16  ;;  %v1732_v15 = vmul.f32 %v3181_v63, %v5005_v42 }
 0x275   : > { %v1424_v1 = vadd.f32 %v1328_v25, %v1022_v23  ;;  %v1730_v10 = vmul.f32 %v3181_v63, %v5006_v17  ;;  %v624_v5 = vmul.f32 %v3153_v39, %v5007_v9  ;;  %v1429_v11 = vadd.f32 %v1333_v44, %v1027_v54 }
 0x276   : > { %2085 = vmatpush1.bf16.xpose.msra.mxu0 %v2068_v41  ;;  %v1431_v21 = vadd.f32 %v1335_v12, %v1029_v60  ;;  %v626_v62 = vmul.f32 %v3153_v39, %v5008_v28  ;;  %v930_v40 = vmul.f32 %v3149_v55, %v5009_v51  ;;  %v932_v42 = vmul.f32 %v3149_v55, %v5010_v56  ;;  %v5012_v41 = vld [vmem:[#allocation29_spill] sm:$0xff] }
 0x277   : > { %2086 = vmatprep.subr.bf16.mxu0 %v2071_v27  ;;  %v1828_v33 = vadd.f32 %v1732_v15, %v1426_v22  ;;  %v1737_v6 = vmul.f32 %v3183_v36, %v4008_v61  ;;  %v1831_v17 = vadd.f32 %v1735_v47, %v1429_v11  ;;  %v1826_v19 = vadd.f32 %v1730_v10, %v1424_v1  ;;  %v5013_v10 = vld [vmem:[#allocation18_spill] sm:$0xff] }
 0x278   : > { %v1332_v9 = vmul.f32 %v3165_v58, %v1216_v37  ;;  %v1334_v54 = vmul.f32 %v3165_v58, %v1220_v46  ;;  %v1026_v3 = vadd.f32 %v930_v40, %v624_v5  ;;  %v1028_v57 = vadd.f32 %v932_v42, %v626_v62  ;;  %v5015_v40 = vld [vmem:[#allocation25_spill] sm:$0xff] }
 0x279   : > { %v1833_v60 = vadd.f32 %v1737_v6, %v1431_v21  ;;  %v1734_v8 = vmul.f32 %v3181_v63, %v1618_v45  ;;  %v2070_v28 = vpack.c.bf16 %v1828_v33, %v1826_v19  ;;  %v1736_v56 = vmul.f32 %v3181_v63, %v4008_v61  ;;  %v5016_v33 = vld [vmem:[#allocation21_spill] sm:$0xff] }
 0x27a   : > { %v1428_v51 = vadd.f32 %v1332_v9, %v1026_v3  ;;  %v1430_v24 = vadd.f32 %v1334_v54, %v1028_v57  ;;  %v2042_v46 = vpack.c.bf16 %v4041_v59, %v4029_v31  ;;  %v2045_v37 = vpack.c.bf16 %v4089_v0, %v4055_v29 }
 0x27b   : > { %v2073_v14 = vpack.c.bf16 %v1833_v60, %v1831_v17  ;;  %v2044_v43 = vpack.c.bf16 %v4084_v26, %v4047_v52 }
 0x27c   : > { %v1830_v47 = vadd.f32 %v1734_v8, %v1428_v51  ;;  %v1832_v38 = vadd.f32 %v1736_v56, %v1430_v24  ;;  %v5017_v8 = vld [vmem:[#allocation23_spill] sm:$0xff]  ;;  %v5019_v24 = vld [vmem:[#allocation24_spill] sm:$0xff] }
 0x27e   : > { %2087 = vmatpush1.bf16.xpose.msra.mxu0 %v2070_v28  ;;  %v2072_v20 = vpack.c.bf16 %v1832_v38, %v1830_v47  ;;  %v5020_v38 = vld [vmem:[#allocation31_spill] sm:$0xff] }
 0x27f   : > { %2088 = vmatprep.subr.bf16.mxu0 %v2073_v14  ;;  %v5018_v14 = vld [vmem:[#allocation30_spill] sm:$0xff] }
 0x286   : > { %2089 = vmatpush1.bf16.xpose.msra.mxu0 %v2072_v20 }
 0x28d   : > { %2107 = vmatmul.mubr.bf16.vlgmr.msra.gmra.mrb[0].mxu0 %v2042_v46 }
 0x28e   : > { %2114 = vmatprep.mubr.bf16.mxu0 %v2045_v37 }
 0x295   : > { %2115 = vmatmul.mubr.bf16.gmra.mrb[4].mxu0 %v2044_v43 }
 0x2be   : > { %v1851_v35 = vpop.xlane.xlu0 %1850 }
 0x2bf   : > { %v1892_v25 = vsub.f32 %v3730_v13, %v1851_v35  ;;  %v1893_v61 = vsub.f32 %v3732_v50, %v1851_v35  ;;  %v5011_v50 = vld [vmem:[#allocation16_spill] sm:$0xff] }
 0x2c0   : > { %v1848_v16 = vpop.xlane.xlu1 %1847 }
 0x2c1   : > { %v1934_v44 = vmul.f32 1.442695, %v1892_v25  ;;  %v1936_v12 = vmul.f32 1.442695, %v1893_v61  ;;  %v1890_v45 = vsub.f32 %v3739_v32, %v1848_v16  ;;  %v1891_v31 = vsub.f32 %v3741_v30, %v1848_v16 }
 0x2c2   : > { %v1857_v59 = vpop.xlane.xlu0 %1856 }
 0x2c3   : > { %2596 = vpow2.f32 %v1934_v44  ;;  %v1930_v29 = vmul.f32 1.442695, %v1890_v45  ;;  %v1932_v0 = vmul.f32 1.442695, %v1891_v31  ;;  %v1896_v23 = vsub.f32 %v3728_v2, %v1857_v59  ;;  %v5014_v2 = vld [vmem:[#allocation19_spill] sm:$0xff] }
 0x2c4   : > { %2598 = vpow2.f32 %v1936_v12  ;;  %v1897_v52 = vsub.f32 %v3735_v53, %v1857_v59  ;;  %v1854_v26 = vpop.xlane.xlu1 %1853 }
 0x2c5   : > { %2600 = vpow2.f32 %v1930_v29  ;;  %v1942_v13 = vmul.f32 1.442695, %v1896_v23  ;;  %v1894_v22 = vsub.f32 %v5011_v50, %v1854_v26  ;;  %v1895_v27 = vsub.f32 %v5012_v41, %v1854_v26 }
 0x2c6   : > { %2602 = vpow2.f32 %v1932_v0  ;;  %v1944_v32 = vmul.f32 1.442695, %v1897_v52  ;;  %v1863_v15 = vpop.xlane.xlu0 %1862 }
 0x2c7   : > { %2604 = vpow2.f32 %v1942_v13  ;;  %v1938_v30 = vmul.f32 1.442695, %v1894_v22  ;;  %v1940_v1 = vmul.f32 1.442695, %v1895_v27  ;;  %v1900_v5 = vsub.f32 %v5013_v10, %v1863_v15 }
 0x2c8   : > { %2606 = vpow2.f32 %v1944_v32  ;;  %v1901_v11 = vsub.f32 %v5014_v2, %v1863_v15  ;;  %v5021_v32 = vld [vmem:[#allocation26_spill] sm:$0xff] }
 0x2c9   : > { %2608 = vpow2.f32 %v1938_v30  ;;  %v1950_v53 = vmul.f32 1.442695, %v1900_v5  ;;  %v5022_v30 = vld [vmem:[#allocation36_spill] sm:$0xff] }
 0x2ca   : > { %2610 = vpow2.f32 %v1940_v1  ;;  %v1952_v21 = vmul.f32 1.442695, %v1901_v11  ;;  %v1869_v62 = vpop.xlane.xlu0 %1868 }
 0x2cb   : > { %2612 = vpow2.f32 %v1950_v53  ;;  %v1904_v42 = vsub.f32 %v5015_v40, %v1869_v62  ;;  %v1905_v6 = vsub.f32 %v5016_v33, %v1869_v62 }
 0x2cc   : > { %2614 = vpow2.f32 %v1952_v21 }
 0x2cd   : > { %v2597_v17 = vpop.eup %2596  ;;  %v1958_v19 = vmul.f32 1.442695, %v1904_v42  ;;  %v1960_v9 = vmul.f32 1.442695, %v1905_v6 }
 0x2ce   : > { %v2599_v54 = vpop.eup %2598  ;;  %v1875_v60 = vpop.xlane.xlu0 %1874 }
 0x2cf   : > { %v1860_v3 = vpop.xlane.xlu1 %1859  ;;  %v2601_v57 = vpop.eup %2600  ;;  %2616 = vpow2.f32 %v1958_v19  ;;  %v1908_v28 = vsub.f32 %v5017_v8, %v1875_v60  ;;  %v1909_v51 = vsub.f32 %v5018_v14, %v1875_v60  ;;  %v1993_v46 = vadd.f32 %v2599_v54, %v2597_v17 }
 0x2d0   : > { %v1898_v56 = vsub.f32 %v5019_v24, %v1860_v3  ;;  %v2603_v47 = vpop.eup %2602  ;;  %2618 = vpow2.f32 %v1960_v9  ;;  %v1899_v20 = vsub.f32 %v5020_v38, %v1860_v3  ;;  %v2046_v37 = vpack.c.bf16 %v2597_v17, %v2601_v57 }
 0x2d1   : > { %v2605_v43 = vpop.eup %2604  ;;  %v1966_v35 = vmul.f32 1.442695, %v1908_v28  ;;  %v1968_v25 = vmul.f32 1.442695, %v1909_v51  ;;  %v2047_v16 = vpack.c.bf16 %v2599_v54, %v2603_v47  ;;  %1994 = vadd.xlane.f32.xlu0 %v1993_v46  ;;  %v1990_v45 = vadd.f32 %v2603_v47, %v2601_v57 }
 0x2d2   : > { %v1946_v61 = vmul.f32 1.442695, %v1898_v56  ;;  %v2607_v44 = vpop.eup %2606  ;;  %v1948_v12 = vmul.f32 1.442695, %v1899_v20  ;;  %v2744_v51 = vmov 0.0  }
 0x2d3   : > { %v2609_v31 = vpop.eup %2608  ;;  %2620 = vpow2.f32 %v1966_v35  ;;  %2122 = vmatprep.mubr.bf16.mxu0 %v2047_v16  ;;  %v1999_v59 = vadd.f32 %v2607_v44, %v2605_v43  ;;  %1991 = vadd.xlane.f32.xlu1 %v1990_v45  ;;  %v5023_v35 = vld [vmem:[#allocation39_spill] sm:$0xff] }
 0x2d4   : > { %v2611_v29 = vpop.eup %2610  ;;  %2622 = vpow2.f32 %v1968_v25  ;;  %2123 = vmatmul.mubr.bf16.gmra.mrb[8].mxu0 %v2046_v37  ;;  %v2048_v27 = vpack.c.bf16 %v2605_v43, %v2609_v31  ;;  %2434 = vmatprep.subr.bf16.mxu1 %v2744_v51 }
 0x2d5   : > { %v2613_v0 = vpop.eup %2612  ;;  %2624 = vpow2.f32 %v1946_v61  ;;  %v2049_v23 = vpack.c.bf16 %v2607_v44, %v2611_v29  ;;  %v1996_v52 = vadd.f32 %v2611_v29, %v2609_v31  ;;  %2000 = vadd.xlane.f32.xlu0 %v1999_v59  ;;  %2450 = vmatprep.mubr.msk.bf16.mxu1 %vm2745_vm0, %v2744_v51 }
 0x2d6   : > { %v2615_v26 = vpop.eup %2614  ;;  %2626 = vpow2.f32 %v1948_v12 }
 0x2d7   : > { %2130 = vmatprep.mubr.bf16.mxu0 %v2049_v23  ;;  %v2005_v13 = vadd.f32 %v2615_v26, %v2613_v0  ;;  %1997 = vadd.xlane.f32.xlu1 %v1996_v52  ;;  %v225_v23 = vld [vmem:[%s4707_s1] sm:$0xff]  ;;  %v5024_v52 = vmov 1  }
 0x2d9   : > { %v2617_v50 = vpop.eup %2616  ;;  %2006 = vadd.xlane.f32.xlu0 %v2005_v13  ;;  %v227_v13 = vld [vmem:[%s4707_s1 + $0x10] sm:$0xff] }
 0x2da   : > { %v2619_v22 = vpop.eup %2618  ;;  %v1866_v41 = vpop.xlane.xlu1 %1865 }
 0x2db   : > { %v1902_v15 = vsub.f32 %v5021_v32, %v1866_v41  ;;  %v1903_v1 = vsub.f32 %v5022_v30, %v1866_v41  ;;  %v2011_v10 = vadd.f32 %v2619_v22, %v2617_v50  ;;  %v5026_v41 = vmov 3   ;;  %v228_v32 = vld [vmem:[%s4707_s1 + $0x18] sm:$0xff] }
 0x2dc   : > { %2131 = vmatmul.mubr.bf16.gmra.mrb[12].mxu0 %v2048_v27  ;;  %v5027_v27 = vmov 0   ;;  %v4204_v30 = vld [vmem:[%s4707_s1 + $0x58] sm:$0xff] }
 0x2dd   : > { %v2621_v5 = vpop.eup %2620  ;;  %v1954_v2 = vmul.f32 1.442695, %v1902_v15  ;;  %v1956_v11 = vmul.f32 1.442695, %v1903_v1  ;;  %2012 = vadd.xlane.f32.xlu0 %v2011_v10  ;;  %v4198_v15 = vld [vmem:[%s4707_s1 + $0x40] sm:$0xff]  ;;  %v4221_v10 = vld [vmem:[%s4707_s1 + $0x70] sm:$0xff] }
 0x2de   : > { %v2623_v53 = vpop.eup %2622  ;;  %v4215_v1 = vld [vmem:[%s4707_s1 + $0x20] sm:$0xff] }
 0x2df   : > { %v2625_v21 = vpop.eup %2624  ;;  %2628 = vpow2.f32 %v1954_v2  ;;  %v2017_v62 = vadd.f32 %v2623_v53, %v2621_v5 }
 0x2e0   : > { %v2627_v40 = vpop.eup %2626  ;;  %2630 = vpow2.f32 %v1956_v11  ;;  %v2050_v6 = vpack.c.bf16 %v2613_v0, %v2625_v21 }
 0x2e1   : > { %v2051_v42 = vpack.c.bf16 %v2615_v26, %v2627_v40  ;;  %v2002_v33 = vadd.f32 %v2627_v40, %v2625_v21  ;;  %2018 = vadd.xlane.f32.xlu0 %v2017_v62  ;;  %v226_v26 = vld [vmem:[%s4707_s1 + $0x8] sm:$0xff]  ;;  %v4245_v21 = vld [vmem:[%s4707_s1 + $0x60] sm:$0xff]  ;;  %v4253_v40 = vld [vmem:[%s4707_s1 + $0x78] sm:$0xff] }
 0x2e3   : > { %2138 = vmatprep.mubr.bf16.mxu0 %v2051_v42  ;;  %2003 = vadd.xlane.f32.xlu1 %v2002_v33 }
 0x2e4   : > { %2139 = vmatmul.mubr.bf16.gmra.mrb[16].mxu0 %v2050_v6 }
 0x2e6   : > { %v1872_v17 = vpop.xlane.xlu1 %1871 }
 0x2e7   : > { %v1906_v19 = vsub.f32 %v3971_v34, %v1872_v17  ;;  %v1907_v9 = vsub.f32 %v3973_v18, %v1872_v17 }
 0x2e9   : > { %v2629_v54 = vpop.eup %2628  ;;  %v1962_v60 = vmul.f32 1.442695, %v1906_v19  ;;  %v1964_v3 = vmul.f32 1.442695, %v1907_v9  ;;  %v232_v9 = vld [vmem:[%s4707_s1 + $0x38] sm:$0xff] }
 0x2ea   : > { %v2631_v57 = vpop.eup %2630  ;;  %v2052_v8 = vpack.c.bf16 %v2617_v50, %v2629_v54  ;;  %v230_v50 = vld [vmem:[%s4707_s1 + $0x28] sm:$0xff] }
 0x2eb   : > { %2632 = vpow2.f32 %v1962_v60  ;;  %v2053_v28 = vpack.c.bf16 %v2619_v22, %v2631_v57  ;;  %v2008_v14 = vadd.f32 %v2631_v57, %v2629_v54  ;;  %v5025_v22 = vmov 2   ;;  %v2187_v60 = vld [vmem:[%s4710_s4] sm:$0xff]  ;;  %v2188_v57 = vld [vmem:[%s4710_s4 + $0x8] sm:$0xff] }
 0x2ec   : > { %2634 = vpow2.f32 %v1964_v3 }
 0x2ed   : > { %2146 = vmatprep.mubr.bf16.mxu0 %v2053_v28  ;;  %2009 = vadd.xlane.f32.xlu1 %v2008_v14 }
 0x2ee   : > { %2147 = vmatmul.mubr.bf16.gmra.mrb[20].mxu0 %v2052_v8 }
 0x2f1   : > { %v1878_v24 = vpop.xlane.xlu1 %1877 }
 0x2f2   : > { %v1910_v34 = vsub.f32 %v4025_v48, %v1878_v24  ;;  %v1911_v18 = vsub.f32 %v4027_v4, %v1878_v24 }
 0x2f4   : > { %v1970_v56 = vmul.f32 1.442695, %v1910_v34  ;;  %v1972_v47 = vmul.f32 1.442695, %v1911_v18 }
 0x2f5   : > { %v2633_v38 = vpop.eup %2632  ;;  %v1980_v2 = vpop.xlane.xlu1 %1979 }
 0x2f6   : > { %v2635_v20 = vpop.eup %2634  ;;  %2636 = vpow2.f32 %v1970_v56  ;;  %v1881_v46 = vpop.xlane.xlu0 %1880  ;;  %v2054_v37 = vpack.c.bf16 %v2621_v5, %v2633_v38  ;;  %v4232_v5 = vld [vmem:[%s4707_s1 + $0x30] sm:$0xff] }
 0x2f7   : > { %2638 = vpow2.f32 %v1972_v47  ;;  %v1912_v43 = vsub.f32 %v4059_v49, %v1881_v46  ;;  %v1913_v25 = vsub.f32 %v5023_v35, %v1881_v46  ;;  %v2055_v61 = vpack.c.bf16 %v2623_v53, %v2635_v20  ;;  %v4239_v53 = vld [vmem:[%s4707_s1 + $0x48] sm:$0xff]  ;;  %v2189_v46 = vld [vmem:[%s4710_s4 + $0x10] sm:$0xff] }
 0x2f8   : > { %v2014_v16 = vadd.f32 %v2635_v20, %v2633_v38 }
 0x2f9   : > { %v1974_v44 = vmul.f32 1.442695, %v1912_v43  ;;  %v1976_v12 = vmul.f32 1.442695, %v1913_v25  ;;  %2154 = vmatprep.mubr.bf16.mxu0 %v2055_v61  ;;  %v1986_v62 = vpop.xlane.xlu1 %1985  ;;  %v2190_v43 = vld [vmem:[%s4710_s4 + $0x18] sm:$0xff] }
 0x2fa   : > { %2015 = vadd.xlane.f32.xlu1 %v2014_v16  ;;  %2155 = vmatmul.mubr.bf16.gmra.mrb[24].mxu0 %v2054_v37  ;;  %v1983_v11 = vpop.xlane.xlu0 %1982 }
 0x2fb   : > { %2640 = vpow2.f32 %v1974_v44 }
 0x2fc   : > { %2642 = vpow2.f32 %v1976_v12 }
 0x2fd   : > { %2644 = vrcp.f32 %v1980_v2 }
 0x2fe   : > { %2646 = vrcp.f32 %v1983_v11  ;;  %v1989_v42 = vpop.xlane.xlu0 %1988 }
 0x2ff   : > { %2648 = vrcp.f32 %v1986_v62 }
 0x300   : > { %v2637_v48 = vpop.eup %2636  ;;  %2650 = vrcp.f32 %v1989_v42 }
 0x301   : > { %v2639_v4 = vpop.eup %2638 }
 0x302   : > { %v2020_v45 = vadd.f32 %v2639_v4, %v2637_v48 }
 0x304   : > { %2021 = vadd.xlane.f32.xlu1 %v2020_v45 }
 0x305   : > { %v2641_v31 = vpop.eup %2640 }
 0x306   : > { %v2643_v59 = vpop.eup %2642  ;;  %v2056_v29 = vpack.c.bf16 %v2641_v31, %v2637_v48 }
 0x307   : > { %v2023_v0 = vadd.f32 %v2643_v59, %v2641_v31  ;;  %v2057_v49 = vpack.c.bf16 %v2643_v59, %v2639_v4  ;;  %v2645_v33 = vpop.eup %2644 }
 0x308   : > { %v2647_v54 = vpop.eup %2646 }
 0x309   : > { %2024 = vadd.xlane.f32.xlu0 %v2023_v0  ;;  %2162 = vmatprep.mubr.bf16.mxu0 %v2057_v49  ;;  %v2649_v18 = vpop.eup %2648 }
 0x30a   : > { %2163 = vmatmul.mubr.bf16.gmra.mrb[28].mxu0 %v2056_v29  ;;  %v2651_v20 = vpop.eup %2650 }
 0x315   : > { %275 = vperm.xlu1 %2541, %v225_v23  }
 0x319   : > { %2542 = vset.pattern.permute.xlu1 %v5024_v52 }
 0x31a   : > { %629 = vperm.xlu1 %2542, %v225_v23  }
 0x31e   : > { %633 = vperm.xlu1 %2542, %v226_v26  }
 0x31f   : > { %1039 = vperm.xlu0 %2540, %v227_v13  }
 0x322   : > { %2543 = vset.pattern.permute.xlu1 %v5025_v22 }
 0x323   : > { %1051 = vperm.xlu0 %2540, %v230_v50   ;;  %1031 = vperm.xlu1 %2543, %v225_v23  }
 0x327   : > { %1035 = vperm.xlu1 %2543, %v226_v26   ;;  %2552 = vset.pattern.permute.xlu0 %v5026_v41 }
 0x328   : > { %1441 = vperm.xlu0 %2552, %v227_v13  }
 0x32b   : > { %2544 = vset.pattern.permute.xlu1 %v5027_v27 }
 0x32c   : > { %285 = vperm.xlu1 %2544, %v227_v13   ;;  %1453 = vperm.xlu0 %2552, %v230_v50  }
 0x330   : > { %290 = vperm.xlu1 %2544, %v228_v32   ;;  %1465 = vperm.xlu0 %2552, %v4198_v15  }
 0x334   : > { %2545 = vset.pattern.permute.xlu1 %v5024_v52  ;;  %1477 = vperm.xlu0 %2552, %v4204_v30  }
 0x335   : > { %637 = vperm.xlu1 %2545, %v227_v13  }
 0x338   : > { %2568 = vset.pattern.permute.xlu0 %v5027_v27 }
 0x339   : > { %2546 = vset.pattern.permute.xlu1 %v5026_v41  ;;  %280 = vperm.xlu0 %2568, %v226_v26  }
 0x33a   : > { %1433 = vperm.xlu1 %2546, %v225_v23  }
 0x33d   : > { %300 = vperm.xlu0 %2568, %v230_v50  }
 0x33e   : > { %1437 = vperm.xlu1 %2546, %v226_v26   ;;  %v4307_v26 = vld [vmem:[%s4707_s1 + $0x50] sm:$0xff] }
 0x341   : > { %315 = vperm.xlu0 %2568, %v4198_v15  }
 0x342   : > { %2547 = vset.pattern.permute.xlu1 %v5025_v22 }
 0x343   : > { %1043 = vperm.xlu1 %2547, %v228_v32  }
 0x345   : > { %330 = vperm.xlu0 %2568, %v4204_v30  }
 0x347   : > { %2548 = vset.pattern.permute.xlu1 %v5027_v27 }
 0x348   : > { %295 = vperm.xlu1 %2548, %v4215_v1  }
 0x349   : > { %345 = vperm.xlu0 %2568, %v4221_v10  }
 0x34c   : > { %2549 = vset.pattern.permute.xlu1 %v5024_v52 }
 0x34d   : > { %645 = vperm.xlu1 %2549, %v4215_v1   ;;  %2570 = vset.pattern.permute.xlu0 %v5024_v52 }
 0x34e   : > { %641 = vperm.xlu0 %2570, %v228_v32  }
 0x351   : > { %649 = vperm.xlu1 %2549, %v230_v50  }
 0x352   : > { %653 = vperm.xlu0 %2570, %v4232_v5  }
 0x355   : > { %2550 = vset.pattern.permute.xlu1 %v5026_v41 }
 0x356   : > { %1445 = vperm.xlu1 %2550, %v228_v32   ;;  %665 = vperm.xlu0 %2570, %v4239_v53  }
 0x35a   : > { %2551 = vset.pattern.permute.xlu1 %v5025_v22  ;;  %677 = vperm.xlu0 %2570, %v4245_v21  }
 0x35b   : > { %1047 = vperm.xlu1 %2551, %v4215_v1  }
 0x35e   : > { %689 = vperm.xlu0 %2570, %v4253_v40   ;;  %v1995_v48 = vpop.xlane.xlu0 %1994 }
 0x35f   : > { %2553 = vset.pattern.permute.xlu1 %v5027_v27 }
 0x360   : > { %v2108_v6 = vpop.f32.mrb[0].mxu0  ;;  %305 = vperm.xlu1 %2553, %v4232_v5   ;;  %v1992_v12 = vpop.xlane.xlu1 %1991 }
 0x361   : > { %v2171_v17 = vmul.f32 %v2645_v33, %v2108_v6  ;;  %v2110_v19 = vpop.f32.mrb[1].mxu0  ;;  %2652 = vrcp.f32 %v1992_v12 }
 0x362   : > { %v2111_v3 = vpop.f32.mrb[2].mxu0  ;;  %2573 = vset.pattern.permute.xlu0 %v5025_v22  ;;  %v2001_v45 = vpop.xlane.xlu0 %2000  ;;  %2654 = vrcp.f32 %v1995_v48 }
 0x363   : > { %v2172_v8 = vmul.f32 %v2647_v54, %v2111_v3  ;;  %v2113_v28 = vpop.f32.mrb[3].mxu0  ;;  %1063 = vperm.xlu0 %2573, %v4198_v15   ;;  %v2203_v14 = vmul.f32 %v2187_v60, %v2171_v17  ;;  %v2192_v54 = vld [vmem:[%s4710_s4 + $0x28] sm:$0xff] }
 0x364   : > { %310 = vperm.xlu1 %2553, %v232_v9   ;;  %v1998_v4 = vpop.xlane.xlu1 %1997 }
 0x365   : > { %v2204_v24 = vmul.f32 %v2188_v57, %v2172_v8  ;;  %2656 = vrcp.f32 %v1998_v4 }
 0x366   : > { %v2007_v29 = vpop.xlane.xlu0 %2006  ;;  %2658 = vrcp.f32 %v2001_v45 }
 0x367   : > { %v2220_v34 = vpack.c.bf16 %v2204_v24, %v2203_v14  ;;  %1075 = vperm.xlu0 %2573, %v4204_v30   ;;  %v4353_v24 = vld [vmem:[%s4707_s1 + $0x68] sm:$0xff] }
 0x368   : > { %v2116_v56 = vpop.f32.mrb[4].mxu0  ;;  %2554 = vset.pattern.permute.xlu1 %v5024_v52 }
 0x369   : > { %v2173_v47 = vmul.f32 %v2649_v18, %v2116_v56  ;;  %v2118_v38 = vpop.f32.mrb[5].mxu0  ;;  %657 = vperm.xlu1 %2554, %v232_v9   ;;  %2435 = vmatpush3.bf16.xpose.msra.mxu1 %v2220_v34 }
 0x36a   : > { %v2119_v37 = vpop.f32.mrb[6].mxu0  ;;  %2436 = vmatprep.subr.bf16.mxu1 %v2744_v51  ;;  %v4300_v49 = vpop.xlane.xlu0 %2012 }
 0x36b   : > { %v2174_v35 = vmul.f32 %v2651_v20, %v2119_v37  ;;  %v2121_v25 = vpop.f32.mrb[7].mxu0  ;;  %1087 = vperm.xlu0 %2573, %v4221_v10   ;;  %v2205_v61 = vmul.f32 %v2189_v46, %v2173_v47  ;;  %v2653_v42 = vpop.eup %2652 }
 0x36c   : > { %v2655_v19 = vpop.eup %2654  ;;  %v2194_v25 = vld [vmem:[%s4710_s4 + $0x38] sm:$0xff] }
 0x36d   : > { %v2206_v16 = vmul.f32 %v2190_v43, %v2174_v35  ;;  %2555 = vset.pattern.permute.xlu1 %v5026_v41  ;;  %v2193_v43 = vld [vmem:[%s4710_s4 + $0x30] sm:$0xff] }
 0x36e   : > { %1449 = vperm.xlu1 %2555, %v4215_v1   ;;  %v4313_v50 = vpop.xlane.xlu0 %2018 }
 0x36f   : > { %v2221_v44 = vpack.c.bf16 %v2206_v16, %v2205_v61  ;;  %2577 = vset.pattern.permute.xlu0 %v5026_v41  ;;  %v2657_v18 = vpop.eup %2656 }
 0x370   : > { %1493 = vperm.xlu0 %2577, %v4253_v40   ;;  %v2004_v31 = vpop.xlane.xlu1 %2003  ;;  %v2659_v37 = vpop.eup %2658 }
 0x371   : > { %2437 = vmatpush3.bf16.xpose.msra.mxu1 %v2221_v44  ;;  %2660 = vrcp.f32 %v2004_v31 }
 0x372   : > { %2556 = vset.pattern.permute.xlu1 %v5025_v22  ;;  %2438 = vmatprep.subr.bf16.mxu1 %v2744_v51  ;;  %2662 = vrcp.f32 %v2007_v29 }
 0x373   : > { %1055 = vperm.xlu1 %2556, %v4232_v5  }
 0x374   : > { %2579 = vset.pattern.permute.xlu0 %v5027_v27 }
 0x377   : > { %1059 = vperm.xlu1 %2556, %v232_v9  }
 0x37a   : > { %v4294_v59 = vpop.xlane.xlu1 %2009 }
 0x37b   : > { %2557 = vset.pattern.permute.xlu1 %v5027_v27  ;;  %v2661_v31 = vpop.eup %2660  ;;  %2664 = vrcp.f32 %v4294_v59 }
 0x37c   : > { %320 = vperm.xlu1 %2557, %v4239_v53   ;;  %2666 = vrcp.f32 %v4300_v49 }
 0x380   : > { %2558 = vset.pattern.permute.xlu1 %v5024_v52 }
 0x381   : > { %661 = vperm.xlu1 %2558, %v4198_v15  }
 0x385   : > { %2559 = vset.pattern.permute.xlu1 %v5026_v41 }
 0x386   : > { %1457 = vperm.xlu1 %2559, %v4232_v5  }
 0x387   : > { %v4296_v0 = vpop.xlane.xlu1 %2015 }
 0x388   : > { %2668 = vrcp.f32 %v4296_v0 }
 0x389   : > { %2670 = vrcp.f32 %v4313_v50 }
 0x38a   : > { %1461 = vperm.xlu1 %2559, %v232_v9  }
 0x38e   : > { %2560 = vset.pattern.permute.xlu1 %v5025_v22 }
 0x38f   : > { %1067 = vperm.xlu1 %2560, %v4239_v53  }
 0x391   : > { %v4302_v23 = vpop.xlane.xlu1 %2021 }
 0x392   : > { %2672 = vrcp.f32 %v4302_v23 }
 0x393   : > { %2561 = vset.pattern.permute.xlu1 %v5027_v27 }
 0x394   : > { %325 = vperm.xlu1 %2561, %v4307_v26  }
 0x395   : > { %v4311_v13 = vpop.permute.xlu1 %275 }
 0x396   : > { %v4319_v15 = vpop.xlane.xlu0 %2024 }
 0x397   : > { %2674 = vrcp.f32 %v4319_v15 }
 0x398   : > { %2562 = vset.pattern.permute.xlu1 %v5024_v52 }
 0x399   : > { %v4316_v32 = vpop.permute.xlu1 %629  ;;  %669 = vperm.xlu1 %2562, %v4307_v26  }
 0x39a   : > { %v838_v23 = vmul.f32 %v3149_v55, %v4316_v32 }
 0x39d   : > { %v4321_v1 = vpop.permute.xlu1 %633  ;;  %673 = vperm.xlu1 %2562, %v4204_v30  }
 0x39e   : > { %v4324_v5 = vpop.permute.xlu0 %1039  ;;  %v840_v15 = vmul.f32 %v3149_v55, %v4321_v1 }
 0x3a1   : > { %2563 = vset.pattern.permute.xlu1 %v5026_v41 }
 0x3a2   : > { %v4327_v2 = vpop.permute.xlu1 %1031  ;;  %1469 = vperm.xlu1 %2563, %v4239_v53   ;;  %v4330_v11 = vpop.permute.xlu0 %1051  ;;  %v2191_v53 = vld [vmem:[%s4710_s4 + $0x20] sm:$0xff] }
 0x3a6   : > { %v4332_v62 = vpop.permute.xlu1 %1035  ;;  %2564 = vset.pattern.permute.xlu1 %v5025_v22 }
 0x3a7   : > { %v2124_v33 = vpop.f32.mrb[8].mxu0  ;;  %v4335_v30 = vpop.permute.xlu0 %1441  ;;  %1071 = vperm.xlu1 %2564, %v4307_v26  }
 0x3a8   : > { %v2175_v6 = vmul.f32 %v2653_v42, %v2124_v33  ;;  %v2126_v17 = vpop.f32.mrb[9].mxu0 }
 0x3a9   : > { %v2127_v9 = vpop.f32.mrb[10].mxu0  ;;  %v2195_v17 = vld [vmem:[%s4710_s4 + $0x40] sm:$0xff] }
 0x3aa   : > { %v2176_v60 = vmul.f32 %v2655_v19, %v2127_v9  ;;  %v2129_v3 = vpop.f32.mrb[11].mxu0  ;;  %v2207_v28 = vmul.f32 %v2191_v53, %v2175_v6  ;;  %v2663_v6 = vpop.eup %2662  ;;  %v2196_v53 = vld [vmem:[%s4710_s4 + $0x48] sm:$0xff] }
 0x3ab   : > { %v4344_v57 = vpop.permute.xlu1 %285  ;;  %v4346_v8 = vpop.permute.xlu0 %1453  ;;  %2565 = vset.pattern.permute.xlu1 %v5027_v27 }
 0x3ac   : > { %v2208_v14 = vmul.f32 %v2192_v54, %v2176_v60  ;;  %335 = vperm.xlu1 %2565, %v4245_v21  }
 0x3ae   : > { %v2222_v34 = vpack.c.bf16 %v2208_v14, %v2207_v28 }
 0x3af   : > { %v2132_v56 = vpop.f32.mrb[12].mxu0  ;;  %v4355_v47 = vpop.permute.xlu1 %290 }
 0x3b0   : > { %v2177_v38 = vmul.f32 %v2657_v18, %v2132_v56  ;;  %v2134_v20 = vpop.f32.mrb[13].mxu0  ;;  %2439 = vmatpush3.bf16.xpose.msra.mxu1 %v2222_v34  ;;  %v4357_v46 = vpop.permute.xlu0 %1465  ;;  %340 = vperm.xlu1 %2565, %v4353_v24  }
 0x3b1   : > { %v2135_v35 = vpop.f32.mrb[14].mxu0  ;;  %2440 = vmatprep.subr.bf16.mxu1 %v2744_v51  ;;  %v2665_v34 = vpop.eup %2664 }
 0x3b2   : > { %v2178_v61 = vmul.f32 %v2659_v37, %v2135_v35  ;;  %v2137_v16 = vpop.f32.mrb[15].mxu0  ;;  %v2209_v44 = vmul.f32 %v2193_v43, %v2177_v38  ;;  %v2197_v43 = vld [vmem:[%s4710_s4 + $0x50] sm:$0xff] }
 0x3b4   : > { %v2210_v12 = vmul.f32 %v2194_v25, %v2178_v61  ;;  %2566 = vset.pattern.permute.xlu1 %v5024_v52  ;;  %v4368_v48 = vpop.permute.xlu1 %637  ;;  %v4370_v4 = vpop.permute.xlu0 %1477  ;;  %v2198_v25 = vld [vmem:[%s4710_s4 + $0x58] sm:$0xff] }
 0x3b5   : > { %681 = vperm.xlu1 %2566, %v4353_v24  }
 0x3b6   : > { %v2223_v45 = vpack.c.bf16 %v2210_v12, %v2209_v44 }
 0x3b7   : > { %v2140_v29 = vpop.f32.mrb[16].mxu0 }
 0x3b8   : > { %v2179_v42 = vmul.f32 %v2661_v31, %v2140_v29  ;;  %v2142_v33 = vpop.f32.mrb[17].mxu0  ;;  %2441 = vmatpush3.bf16.xpose.msra.mxu1 %v2223_v45  ;;  %v4385_v60 = vpop.permute.xlu0 %280 }
 0x3b9   : > { %v2143_v19 = vpop.f32.mrb[18].mxu0  ;;  %v4381_v9 = vpop.permute.xlu1 %1433  ;;  %2442 = vmatprep.subr.bf16.mxu1 %v2744_v51  ;;  %2567 = vset.pattern.permute.xlu1 %v5026_v41 }
 0x3ba   : > { %v2180_v59 = vmul.f32 %v2663_v6, %v2143_v19  ;;  %v2145_v54 = vpop.f32.mrb[19].mxu0  ;;  %1473 = vperm.xlu1 %2567, %v4307_v26   ;;  %v2211_v49 = vmul.f32 %v2195_v17, %v2179_v42  ;;  %v2667_v26 = vpop.eup %2666 }
 0x3bb   : > { %v2669_v42 = vpop.eup %2668  ;;  %v2200_v54 = vld [vmem:[%s4710_s4 + $0x68] sm:$0xff] }
 0x3bc   : > { %v2212_v3 = vmul.f32 %v2196_v53, %v2180_v59  ;;  %v4392_v56 = vpop.permute.xlu0 %300  ;;  %v2671_v19 = vpop.eup %2670  ;;  %v2199_v53 = vld [vmem:[%s4710_s4 + $0x60] sm:$0xff] }
 0x3bd   : > { %v4388_v28 = vpop.permute.xlu1 %1437 }
 0x3be   : > { %v2224_v14 = vpack.c.bf16 %v2212_v3, %v2211_v49  ;;  %2569 = vset.pattern.permute.xlu1 %v5025_v22 }
 0x3bf   : > { %1079 = vperm.xlu1 %2569, %v4245_v21  }
 0x3c0   : > { %2443 = vmatpush3.bf16.xpose.msra.mxu1 %v2224_v14  ;;  %v4408_v0 = vpop.permute.xlu0 %315 }
 0x3c1   : > { %v2148_v18 = vpop.f32.mrb[20].mxu0  ;;  %2444 = vmatprep.subr.bf16.mxu1 %v2744_v51 }
 0x3c2   : > { %v2181_v38 = vmul.f32 %v2665_v34, %v2148_v18  ;;  %v2150_v20 = vpop.f32.mrb[21].mxu0  ;;  %v4395_v37 = vpop.permute.xlu1 %1043  ;;  %v5029_v18 = vld [vmem:[#allocation27_spill] sm:$0xff] }
 0x3c3   : > { %v2151_v35 = vpop.f32.mrb[22].mxu0  ;;  %1083 = vperm.xlu1 %2569, %v4353_v24   ;;  %v841_v20 = vmul.f32 %v5029_v18, %v4321_v1  ;;  %v1242_v1 = vmul.f32 %v3165_v58, %v4332_v62 }
 0x3c4   : > { %v2182_v61 = vmul.f32 %v2667_v26, %v2151_v35  ;;  %v2153_v16 = vpop.f32.mrb[23].mxu0  ;;  %v2213_v44 = vmul.f32 %v2197_v43, %v2181_v38  ;;  %v4416_v50 = vpop.permute.xlu0 %330  ;;  %v839_v38 = vmul.f32 %v5029_v18, %v4316_v32  ;;  %v1645_v32 = vmul.f32 %v3183_v36, %v4388_v28 }
 0x3c6   : > { %v2214_v12 = vmul.f32 %v2198_v25, %v2182_v61 }
 0x3c7   : > { %v4406_v45 = vpop.permute.xlu1 %295  ;;  %2571 = vset.pattern.permute.xlu1 %v5027_v27 }
 0x3c8   : > { %v2225_v31 = vpack.c.bf16 %v2214_v12, %v2213_v44  ;;  %350 = vperm.xlu1 %2571, %v4253_v40   ;;  %v4439_v25 = vpop.permute.xlu0 %345  ;;  %v1241_v44 = vmul.f32 %v3167_v7, %v4327_v2  ;;  %v1243_v12 = vmul.f32 %v3167_v7, %v4332_v62  ;;  %v1244_v62 = vmul.f32 %v3165_v58, %v4324_v5 }
 0x3ca   : > { %2445 = vmatpush3.bf16.xpose.msra.mxu1 %v2225_v31 }
 0x3cb   : > { %2446 = vmatprep.subr.bf16.mxu1 %v2744_v51 }
 0x3cc   : > { %v4413_v29 = vpop.permute.xlu1 %645  ;;  %2572 = vset.pattern.permute.xlu1 %v5024_v52  ;;  %v5028_v52 = vld [vmem:[#allocation28_spill] sm:$0xff] }
 0x3cd   : > { %v2156_v33 = vpop.f32.mrb[24].mxu0  ;;  %685 = vperm.xlu1 %2572, %v4221_v10   ;;  %v533_v34 = vmul.f32 %v5028_v52, %v4311_v13  ;;  %v535_v26 = vmul.f32 %v5028_v52, %v4385_v60 }
 0x3ce   : > { %v2183_v6 = vmul.f32 %v2669_v42, %v2156_v33  ;;  %v2158_v17 = vpop.f32.mrb[25].mxu0  ;;  %v532_v42 = vmul.f32 %v3153_v39, %v4311_v13  ;;  %v534_v33 = vmul.f32 %v3153_v39, %v4385_v60  ;;  %v1643_v13 = vmul.f32 %v3183_v36, %v4381_v9 }
 0x3cf   : > { %v2159_v59 = vpop.f32.mrb[26].mxu0  ;;  %v935_v16 = vadd.f32 %v839_v38, %v533_v34  ;;  %v937_v31 = vadd.f32 %v841_v20, %v535_v26  ;;  %v537_v60 = vmul.f32 %v5028_v52, %v4344_v57 }
 0x3d0   : > { %v2184_v49 = vmul.f32 %v2671_v19, %v2159_v59  ;;  %v2161_v3 = vpop.f32.mrb[27].mxu0  ;;  %v4425_v14 = vpop.permute.xlu1 %649  ;;  %v2215_v43 = vmul.f32 %v2199_v53, %v2183_v6  ;;  %v934_v19 = vadd.f32 %v838_v23, %v532_v42  ;;  %v843_v59 = vmul.f32 %v5029_v18, %v4368_v48  ;;  %v2202_v42 = vld [vmem:[%s4710_s4 + $0x78] sm:$0xff] }
 0x3d1   : > { %2574 = vset.pattern.permute.xlu1 %v5026_v41  ;;  %v1337_v6 = vadd.f32 %v1241_v44, %v935_v16  ;;  %v1339_v17 = vadd.f32 %v1243_v12, %v937_v31  ;;  %v642_v53 = vpop.permute.xlu0 %641  ;;  %v842_v16 = vmul.f32 %v3149_v55, %v4368_v48  ;;  %v2201_v12 = vld [vmem:[%s4710_s4 + $0x70] sm:$0xff] }
 0x3d2   : > { %v2216_v35 = vmul.f32 %v2200_v54, %v2184_v49  ;;  %1481 = vperm.xlu1 %2574, %v4245_v21   ;;  %v936_v54 = vadd.f32 %v840_v15, %v534_v33  ;;  %v2673_v49 = vpop.eup %2672  ;;  %v844_v44 = vmul.f32 %v3149_v55, %v642_v53 }
 0x3d3   : > { %v1739_v3 = vadd.f32 %v1643_v13, %v1337_v6  ;;  %v1741_v34 = vadd.f32 %v1645_v32, %v1339_v17  ;;  %v2675_v20 = vpop.eup %2674  ;;  %v1644_v6 = vmul.f32 %v3181_v63, %v4388_v28  ;;  %v1247_v13 = vmul.f32 %v3167_v7, %v4395_v37 }
 0x3d4   : > { %v2226_v61 = vpack.c.bf16 %v2216_v35, %v2215_v43  ;;  %v1338_v15 = vadd.f32 %v1242_v1, %v936_v54  ;;  %v846_v28 = vmul.f32 %v3149_v55, %v4413_v29  ;;  %v847_v1 = vmul.f32 %v5029_v18, %v4413_v29 }
 0x3d5   : > { %v4449_v21 = vpop.permute.xlu1 %1445  ;;  %v2270_v32 = vpack.c.bf16 %v1741_v34, %v1739_v3  ;;  %v849_v54 = vmul.f32 %v5029_v18, %v4425_v14 }
 0x3d6   : > { %2447 = vmatpush3.bf16.xpose.msra.mxu1 %v2226_v61  ;;  %1485 = vperm.xlu1 %2574, %v4353_v24   ;;  %v536_v61 = vmul.f32 %v3153_v39, %v4344_v57  ;;  %v939_v57 = vadd.f32 %v843_v59, %v537_v60  ;;  %v1649_v29 = vmul.f32 %v3183_v36, %v4449_v21 }
 0x3d7   : > { %2448 = vmatprep.subr.bf16.mxu1 %v2744_v51  ;;  %v1240_v51 = vmul.f32 %v3165_v58, %v4327_v2  ;;  %v539_v2 = vmul.f32 %v5028_v52, %v4355_v47 }
 0x3d9   : > { %v1336_v26 = vadd.f32 %v1240_v51, %v934_v19  ;;  %v1246_v19 = vmul.f32 %v3165_v58, %v4395_v37  ;;  %v543_v37 = vmul.f32 %v5028_v52, %v4392_v56 }
 0x3da   : > { %v4463_v24 = vpop.permute.xlu1 %1047  ;;  %2575 = vset.pattern.permute.xlu1 %v5025_v22  ;;  %v845_v22 = vmul.f32 %v5029_v18, %v642_v53 }
 0x3db   : > { %1091 = vperm.xlu1 %2575, %v4253_v40   ;;  %v538_v40 = vmul.f32 %v3153_v39, %v4355_v47  ;;  %v1642_v47 = vmul.f32 %v3181_v63, %v4381_v9  ;;  %v540_v9 = vmul.f32 %v3153_v39, %v4406_v45 }
 0x3dc   : > { %v941_v17 = vadd.f32 %v845_v22, %v539_v2  ;;  %v938_v2 = vadd.f32 %v842_v16, %v536_v61  ;;  %v1740_v22 = vadd.f32 %v1644_v6, %v1338_v15  ;;  %v945_v61 = vadd.f32 %v849_v54, %v543_v37 }
 0x3dd   : > { %v2164_v38 = vpop.f32.mrb[28].mxu0  ;;  %v940_v60 = vadd.f32 %v844_v44, %v538_v40  ;;  %v1738_v34 = vadd.f32 %v1642_v47, %v1336_v26  ;;  %v1648_v16 = vmul.f32 %v3181_v63, %v4449_v21  ;;  %v1248_v26 = vmul.f32 %v3165_v58, %v4463_v24  ;;  %v2219_v21 = vld [vmem:[%s4708_s2] sm:$0x3] }
 0x3de   : > { %v2185_v43 = vmul.f32 %v2673_v49, %v2164_v38  ;;  %v2166_v35 = vpop.f32.mrb[29].mxu0  ;;  %v1343_v3 = vadd.f32 %v1247_v13, %v941_v17  ;;  %v848_v38 = vmul.f32 %v3149_v55, %v4425_v14  ;;  %v1249_v44 = vmul.f32 %v3167_v7, %v4463_v24 }
 0x3df   : > { %v2167_v31 = vpop.f32.mrb[30].mxu0  ;;  %v4491_v23 = vpop.permute.xlu1 %305  ;;  %2576 = vset.pattern.permute.xlu1 %v5026_v41  ;;  %v541_v41 = vmul.f32 %v5028_v52, %v4406_v45  ;;  %v1647_v45 = vmul.f32 %v3183_v36, %v4335_v30  ;;  %v1342_v40 = vadd.f32 %v1246_v19, %v940_v60  ;;  %v1646_v14 = vmul.f32 %v3181_v63, %v4335_v30 }
 0x3e0   : > { %v2186_v33 = vmul.f32 %v2675_v20, %v2167_v31  ;;  %v2169_v48 = vpop.f32.mrb[31].mxu0  ;;  %1489 = vperm.xlu1 %2576, %v4221_v10   ;;  %v2217_v51 = vmul.f32 %v2201_v12, %v2185_v43  ;;  %v1245_v10 = vmul.f32 %v3167_v7, %v4324_v5  ;;  %v542_v5 = vmul.f32 %v3153_v39, %v4392_v56  ;;  %v654_v12 = vpop.permute.xlu0 %653 }
 0x3e1   : > { %v942_v43 = vadd.f32 %v846_v28, %v540_v9  ;;  %v943_v35 = vadd.f32 %v847_v1, %v541_v41  ;;  %v1340_v31 = vadd.f32 %v1244_v62, %v938_v2  ;;  %v2269_v47 = vpack.c.bf16 %v1740_v22, %v1738_v34 }
 0x3e2   : > { %v2218_v53 = vmul.f32 %v2202_v42, %v2186_v33  ;;  %v1341_v20 = vadd.f32 %v1245_v10, %v939_v57  ;;  %v1745_v42 = vadd.f32 %v1649_v29, %v1343_v3  ;;  %v1251_v57 = vmul.f32 %v3167_v7, %v4330_v11 }
 0x3e3   : > { %v4511_v59 = vpop.permute.xlu1 %310  ;;  %v944_v15 = vadd.f32 %v848_v38, %v542_v5  ;;  %v1250_v33 = vmul.f32 %v3165_v58, %v4330_v11  ;;  %v1653_v24 = vmul.f32 %v3183_v36, %v4346_v8  ;;  %v1744_v30 = vadd.f32 %v1648_v16, %v1342_v40 }
 0x3e4   : > { %v2227_v49 = vpack.c.bf16 %v2218_v53, %v2217_v51  ;;  %2578 = vset.pattern.permute.xlu1 %v5027_v27  ;;  %v1743_v48 = vadd.f32 %v1647_v45, %v1341_v20  ;;  %v1347_v6 = vadd.f32 %v1251_v57, %v945_v61  ;;  %v1344_v62 = vadd.f32 %v1248_v26, %v942_v43  ;;  %v4545_v17 = vpop.permute.xlu0 %665 }
 0x3e5   : > { %v1345_v13 = vadd.f32 %v1249_v44, %v943_v35  ;;  %v1742_v19 = vadd.f32 %v1646_v14, %v1340_v31  ;;  %v1346_v53 = vadd.f32 %v1250_v33, %v944_v15  ;;  %v545_v34 = vmul.f32 %v5028_v52, %v4491_v23 }
 0x3e6   : > { %2449 = vmatpush3.bf16.xpose.msra.mxu1 %v2227_v49  ;;  %v2272_v51 = vpack.c.bf16 %v1745_v42, %v1743_v48  ;;  %v1749_v10 = vadd.f32 %v1653_v24, %v1347_v6  ;;  %v850_v22 = vmul.f32 %v3149_v55, %v654_v12  ;;  %v851_v5 = vmul.f32 %v5029_v18, %v654_v12 }
 0x3e7   : > { %2291 = vmatprep.subr.bf16.mxu1 %v2270_v32  ;;  %v1652_v32 = vmul.f32 %v3181_v63, %v4346_v8  ;;  %v2271_v28 = vpack.c.bf16 %v1744_v30, %v1742_v19  ;;  %v548_v20 = vmul.f32 %v3153_v39, %v4408_v0  ;;  %v549_v43 = vmul.f32 %v5028_v52, %v4408_v0 }
 0x3e8   : > { %v658_v56 = vpop.permute.xlu1 %657  ;;  %v4552_v49 = vpop.permute.xlu0 %677  ;;  %v546_v35 = vmul.f32 %v3153_v39, %v4511_v59  ;;  %v547_v40 = vmul.f32 %v5028_v52, %v4511_v59  ;;  %v947_v57 = vadd.f32 %v851_v5, %v545_v34  ;;  %v1658_v59 = vmul.f32 %v3181_v63, %v4357_v46 }
 0x3e9   : > { %v1748_v37 = vadd.f32 %v1652_v32, %v1346_v53  ;;  %v852_v61 = vmul.f32 %v3149_v55, %v658_v56 }
 0x3ec   : > { %v4554_v3 = vpop.permute.xlu0 %689 }
 0x3ed   : > { %2451 = vmatmul.mubr.bf16.vlgmr.msra.gmra.mrb[0].mxu1 %v2219_v21  ;;  %v1450_v9 = vpop.permute.xlu1 %1449  ;;  %v948_v21 = vadd.f32 %v852_v61, %v546_v35  ;;  %v554_v35 = vmul.f32 %v3153_v39, %v4416_v50 }
 0x3ee   : > { %v1650_v11 = vmul.f32 %v3181_v63, %v1450_v9  ;;  %v1651_v41 = vmul.f32 %v3183_v36, %v1450_v9  ;;  %2292 = vmatpush1.bf16.msra.mxu1 %v2269_v47  ;;  %2323 = vmatprep.mubr.bf16.mxu1 %v5027_v27  ;;  %v544_v27 = vmul.f32 %v3153_v39, %v4491_v23 }
 0x3ef   : > { %2293 = vmatprep.subr.bf16.mxu1 %v2272_v51  ;;  %v853_v23 = vmul.f32 %v5029_v18, %v658_v56  ;;  %v1659_v56 = vmul.f32 %v3183_v36, %v4357_v46 }
 0x3f0   : > { %v1746_v1 = vadd.f32 %v1650_v11, %v1344_v62  ;;  %v1747_v60 = vadd.f32 %v1651_v41, %v1345_v13  ;;  %v1064_v38 = vpop.permute.xlu0 %1063  ;;  %v946_v42 = vadd.f32 %v850_v22, %v544_v27 }
 0x3f1   : > { %v1256_v12 = vmul.f32 %v3165_v58, %v1064_v38  ;;  %v1257_v14 = vmul.f32 %v3167_v7, %v1064_v38  ;;  %v949_v33 = vadd.f32 %v853_v23, %v547_v40  ;;  %v856_v38 = vmul.f32 %v3149_v55, %v4545_v17 }
 0x3f2   : > { %2294 = vmatpush1.bf16.msra.mxu1 %v2271_v28  ;;  %v2274_v8 = vpack.c.bf16 %v1749_v10, %v1747_v60  ;;  %v1056_v54 = vpop.permute.xlu1 %1055  ;;  %v2273_v45 = vpack.c.bf16 %v1748_v37, %v1746_v1  ;;  %v555_v40 = vmul.f32 %v5028_v52, %v4416_v50  ;;  %v1665_v50 = vmul.f32 %v3183_v36, %v4370_v4 }
 0x3f3   : > { %v1252_v0 = vmul.f32 %v3165_v58, %v1056_v54  ;;  %v1253_v31 = vmul.f32 %v3167_v7, %v1056_v54 }
 0x3f4   : > { %2295 = vmatprep.subr.bf16.mxu1 %v2274_v8 }
 0x3f5   : > { %v1348_v13 = vadd.f32 %v1252_v0, %v946_v42  ;;  %v1349_v32 = vadd.f32 %v1253_v31, %v947_v57  ;;  %v1664_v0 = vmul.f32 %v3181_v63, %v4370_v4 }
 0x3f6   : > { %2296 = vmatpush1.bf16.msra.mxu1 %v2273_v45  ;;  %v1060_v2 = vpop.permute.xlu1 %1059 }
 0x3f7   : > { %v1254_v24 = vmul.f32 %v3165_v58, %v1060_v2  ;;  %v1255_v48 = vmul.f32 %v3167_v7, %v1060_v2 }
 0x3f9   : > { %v1350_v46 = vadd.f32 %v1254_v24, %v948_v21  ;;  %v1351_v11 = vadd.f32 %v1255_v48, %v949_v33 }
 0x3fb   : > { %v321_v29 = vpop.permute.xlu1 %320 }
 0x3fc   : > { %v550_v34 = vmul.f32 %v3153_v39, %v321_v29  ;;  %v551_v22 = vmul.f32 %v5028_v52, %v321_v29 }
 0x400   : > { %v662_v16 = vpop.permute.xlu1 %661 }
 0x401   : > { %v854_v26 = vmul.f32 %v3149_v55, %v662_v16  ;;  %v855_v44 = vmul.f32 %v5029_v18, %v662_v16  ;;  %v952_v16 = vadd.f32 %v856_v38, %v550_v34 }
 0x403   : > { %v950_v47 = vadd.f32 %v854_v26, %v548_v20  ;;  %v951_v15 = vadd.f32 %v855_v44, %v549_v43  ;;  %v857_v20 = vmul.f32 %v5029_v18, %v4545_v17  ;;  %v1076_v43 = vpop.permute.xlu0 %1075 }
 0x404   : > { %v1262_v17 = vmul.f32 %v3165_v58, %v1076_v43 }
 0x405   : > { %v1458_v6 = vpop.permute.xlu1 %1457  ;;  %v1352_v30 = vadd.f32 %v1256_v12, %v950_v47  ;;  %v1353_v62 = vadd.f32 %v1257_v14, %v951_v15  ;;  %v953_v29 = vadd.f32 %v857_v20, %v551_v22  ;;  %v1263_v14 = vmul.f32 %v3167_v7, %v1076_v43  ;;  %v2285_v20 = vld [vmem:[%s4709_s3] sm:$0xf] }
 0x406   : > { %v1654_v19 = vmul.f32 %v3181_v63, %v1458_v6  ;;  %v1655_v9 = vmul.f32 %v3183_v36, %v1458_v6  ;;  %2288 = vperm.xlu1 %2578, %v2285_v20  }
 0x407   : > { %v1754_v51 = vadd.f32 %v1658_v59, %v1352_v30  ;;  %v1755_v53 = vadd.f32 %v1659_v56, %v1353_v62 }
 0x408   : > { %v1750_v28 = vadd.f32 %v1654_v19, %v1348_v13  ;;  %v1751_v1 = vadd.f32 %v1655_v9, %v1349_v32 }
 0x409   : > { %v1462_v41 = vpop.permute.xlu1 %1461 }
 0x40a   : > { %v1656_v60 = vmul.f32 %v3181_v63, %v1462_v41  ;;  %v1657_v10 = vmul.f32 %v3183_v36, %v1462_v41 }
 0x40c   : > { %v1752_v37 = vadd.f32 %v1656_v60, %v1350_v46  ;;  %v1753_v8 = vadd.f32 %v1657_v10, %v1351_v11 }
 0x40e   : > { %v2275_v54 = vpack.c.bf16 %v1752_v37, %v1750_v28  ;;  %v1068_v45 = vpop.permute.xlu1 %1067  ;;  %v2276_v2 = vpack.c.bf16 %v1753_v8, %v1751_v1 }
 0x40f   : > { %v1258_v61 = vmul.f32 %v3165_v58, %v1068_v45  ;;  %v1259_v23 = vmul.f32 %v3167_v7, %v1068_v45 }
 0x410   : > { %2297 = vmatprep.subr.bf16.mxu1 %v2276_v2 }
 0x411   : > { %2298 = vmatpush1.bf16.msra.mxu1 %v2275_v54  ;;  %v1354_v57 = vadd.f32 %v1258_v61, %v952_v16  ;;  %v1355_v59 = vadd.f32 %v1259_v23, %v953_v29 }
 0x413   : > { %v326_v27 = vpop.permute.xlu1 %325 }
 0x414   : > { %v552_v9 = vmul.f32 %v3153_v39, %v326_v27  ;;  %v553_v46 = vmul.f32 %v5028_v52, %v326_v27 }
 0x418   : > { %v670_v5 = vpop.permute.xlu1 %669 }
 0x419   : > { %v858_v11 = vmul.f32 %v3149_v55, %v670_v5  ;;  %v859_v41 = vmul.f32 %v5029_v18, %v670_v5 }
 0x41b   : > { %v954_v1 = vadd.f32 %v858_v11, %v552_v9  ;;  %v955_v60 = vadd.f32 %v859_v41, %v553_v46 }
 0x41c   : > { %v674_v26 = vpop.permute.xlu1 %673 }
 0x41d   : > { %v860_v44 = vmul.f32 %v3149_v55, %v674_v26  ;;  %v861_v12 = vmul.f32 %v5029_v18, %v674_v26 }
 0x41f   : > { %v956_v31 = vadd.f32 %v860_v44, %v554_v35  ;;  %v957_v42 = vadd.f32 %v861_v12, %v555_v40  ;;  %v862_v35 = vmul.f32 %v3149_v55, %v4552_v49  ;;  %v863_v40 = vmul.f32 %v5029_v18, %v4552_v49 }
 0x421   : > { %v1470_v56 = vpop.permute.xlu1 %1469  ;;  %v1358_v47 = vadd.f32 %v1262_v17, %v956_v31  ;;  %v1359_v15 = vadd.f32 %v1263_v14, %v957_v42 }
 0x422   : > { %v1660_v21 = vmul.f32 %v3181_v63, %v1470_v56  ;;  %v1661_v33 = vmul.f32 %v3183_v36, %v1470_v56 }
 0x423   : > { %v1760_v24 = vadd.f32 %v1664_v0, %v1358_v47  ;;  %v1761_v48 = vadd.f32 %v1665_v50, %v1359_v15 }
 0x424   : > { %v1756_v6 = vadd.f32 %v1660_v21, %v1354_v57  ;;  %v1757_v30 = vadd.f32 %v1661_v33, %v1355_v59  ;;  %v560_v33 = vmul.f32 %v3153_v39, %v4439_v25 }
 0x426   : > { %v1072_v62 = vpop.permute.xlu1 %1071  ;;  %v2278_v13 = vpack.c.bf16 %v1757_v30, %v1755_v53  ;;  %v2277_v32 = vpack.c.bf16 %v1756_v6, %v1754_v51  ;;  %v868_v6 = vmul.f32 %v3149_v55, %v4554_v3  ;;  %v869_v30 = vmul.f32 %v5029_v18, %v4554_v3 }
 0x427   : > { %v1260_v10 = vmul.f32 %v3165_v58, %v1072_v62  ;;  %v1261_v53 = vmul.f32 %v3167_v7, %v1072_v62 }
 0x428   : > { %2299 = vmatprep.subr.bf16.mxu1 %v2278_v13 }
 0x429   : > { %2300 = vmatpush1.bf16.msra.mxu1 %v2277_v32  ;;  %v1356_v51 = vadd.f32 %v1260_v10, %v954_v1  ;;  %v1357_v37 = vadd.f32 %v1261_v53, %v955_v60 }
 0x42b   : > { %v336_v4 = vpop.permute.xlu1 %335 }
 0x42c   : > { %v556_v61 = vmul.f32 %v3153_v39, %v336_v4  ;;  %v557_v23 = vmul.f32 %v5028_v52, %v336_v4 }
 0x42e   : > { %v958_v17 = vadd.f32 %v862_v35, %v556_v61  ;;  %v959_v14 = vadd.f32 %v863_v40, %v557_v23 }
 0x42f   : > { %v341_v19 = vpop.permute.xlu1 %340 }
 0x430   : > { %v558_v16 = vmul.f32 %v3153_v39, %v341_v19  ;;  %v559_v29 = vmul.f32 %v5028_v52, %v341_v19 }
 0x434   : > { %v682_v28 = vpop.permute.xlu1 %681 }
 0x435   : > { %v864_v26 = vmul.f32 %v3149_v55, %v682_v28  ;;  %v865_v44 = vmul.f32 %v5029_v18, %v682_v28 }
 0x437   : > { %v960_v49 = vadd.f32 %v864_v26, %v558_v16  ;;  %v961_v31 = vadd.f32 %v865_v44, %v559_v29 }
 0x439   : > { %v1474_v8 = vpop.permute.xlu1 %1473 }
 0x43a   : > { %v1662_v54 = vmul.f32 %v3181_v63, %v1474_v8  ;;  %v1663_v45 = vmul.f32 %v3183_v36, %v1474_v8 }
 0x43c   : > { %v1758_v2 = vadd.f32 %v1662_v54, %v1356_v51  ;;  %v1759_v27 = vadd.f32 %v1663_v45, %v1357_v37 }
 0x43e   : > { %v1080_v34 = vpop.permute.xlu1 %1079  ;;  %v2280_v22 = vpack.c.bf16 %v1761_v48, %v1759_v27  ;;  %v2279_v38 = vpack.c.bf16 %v1760_v24, %v1758_v2  ;;  %v561_v24 = vmul.f32 %v5028_v52, %v4439_v25  ;;  %v1088_v48 = vpop.permute.xlu0 %1087 }
 0x43f   : > { %v1264_v0 = vmul.f32 %v3165_v58, %v1080_v34  ;;  %v1265_v50 = vmul.f32 %v3167_v7, %v1080_v34  ;;  %v1268_v53 = vmul.f32 %v3165_v58, %v1088_v48 }
 0x440   : > { %2301 = vmatprep.subr.bf16.mxu1 %v2280_v22 }
 0x441   : > { %2302 = vmatpush1.bf16.msra.mxu1 %v2279_v38  ;;  %v1360_v56 = vadd.f32 %v1264_v0, %v958_v17  ;;  %v1361_v47 = vadd.f32 %v1265_v50, %v959_v14 }
 0x442   : > { %v1084_v5 = vpop.permute.xlu1 %1083 }
 0x443   : > { %v1266_v42 = vmul.f32 %v3165_v58, %v1084_v5  ;;  %v1267_v57 = vmul.f32 %v3167_v7, %v1084_v5 }
 0x445   : > { %v1362_v62 = vadd.f32 %v1266_v42, %v960_v49  ;;  %v1363_v13 = vadd.f32 %v1267_v57, %v961_v31 }
 0x447   : > { %v351_v43 = vpop.permute.xlu1 %350 }
 0x448   : > { %v562_v32 = vmul.f32 %v3153_v39, %v351_v43  ;;  %v563_v4 = vmul.f32 %v5028_v52, %v351_v43  ;;  %v1269_v39 = vmul.f32 %v3167_v7, %v1088_v48  ;;  %v1494_v52 = vpop.permute.xlu0 %1493 }
 0x449   : > { %v1672_v2 = vmul.f32 %v3181_v63, %v1494_v52  ;;  %v1673_v27 = vmul.f32 %v3183_v36, %v1494_v52 }
 0x44a   : > { %v964_v3 = vadd.f32 %v868_v6, %v562_v32  ;;  %v965_v10 = vadd.f32 %v869_v30, %v563_v4 }
 0x44c   : > { %v686_v12 = vpop.permute.xlu1 %685 }
 0x44d   : > { %v866_v19 = vmul.f32 %v3149_v55, %v686_v12  ;;  %v867_v9 = vmul.f32 %v5029_v18, %v686_v12 }
 0x44f   : > { %v962_v51 = vadd.f32 %v866_v19, %v560_v33  ;;  %v963_v55 = vadd.f32 %v867_v9, %v561_v24 }
 0x451   : > { %v1482_v59 = vpop.permute.xlu1 %1481  ;;  %v1364_v38 = vadd.f32 %v1268_v53, %v962_v51  ;;  %v1365_v5 = vadd.f32 %v1269_v39, %v963_v55 }
 0x452   : > { %v1666_v15 = vmul.f32 %v3181_v63, %v1482_v59  ;;  %v1667_v21 = vmul.f32 %v3183_v36, %v1482_v59 }
 0x454   : > { %v1762_v11 = vadd.f32 %v1666_v15, %v1360_v56  ;;  %v1763_v25 = vadd.f32 %v1667_v21, %v1361_v47 }
 0x455   : > { %v1486_v46 = vpop.permute.xlu1 %1485 }
 0x456   : > { %v1668_v41 = vmul.f32 %v3181_v63, %v1486_v46  ;;  %v1669_v28 = vmul.f32 %v3183_v36, %v1486_v46 }
 0x458   : > { %v1764_v1 = vadd.f32 %v1668_v41, %v1362_v62  ;;  %v1765_v60 = vadd.f32 %v1669_v28, %v1363_v13 }
 0x45a   : > { %v2281_v37 = vpack.c.bf16 %v1764_v1, %v1762_v11  ;;  %v1092_v18 = vpop.permute.xlu1 %1091  ;;  %v2282_v8 = vpack.c.bf16 %v1765_v60, %v1763_v25 }
 0x45b   : > { %v1270_v54 = vmul.f32 %v3165_v58, %v1092_v18  ;;  %v1271_v45 = vmul.f32 %v3167_v7, %v1092_v18 }
 0x45c   : > { %2303 = vmatprep.subr.bf16.mxu1 %v2282_v8 }
 0x45d   : > { %v1366_v34 = vadd.f32 %v1270_v54, %v964_v3  ;;  %v1367_v22 = vadd.f32 %v1271_v45, %v965_v10  ;;  %2304 = vmatpush1.bf16.msra.mxu1 %v2281_v37 }
 0x45f   : > { %v1490_v20 = vpop.permute.xlu1 %1489  ;;  %v1768_v43 = vadd.f32 %v1672_v2, %v1366_v34  ;;  %v1769_v35 = vadd.f32 %v1673_v27, %v1367_v22 }
 0x460   : > { %v1670_v40 = vmul.f32 %v3181_v63, %v1490_v20  ;;  %v1671_v58 = vmul.f32 %v3183_v36, %v1490_v20 }
 0x462   : > { %v1766_v61 = vadd.f32 %v1670_v40, %v1364_v38  ;;  %v1767_v7 = vadd.f32 %v1671_v58, %v1365_v5 }
 0x464   : > { %v2283_v23 = vpack.c.bf16 %v1768_v43, %v1766_v61  ;;  %v2284_v16 = vpack.c.bf16 %v1769_v35, %v1767_v7 }
 0x466   : > { %2305 = vmatprep.subr.bf16.mxu1 %v2284_v16 }
 0x467   : > { %2306 = vmatpush1.bf16.msra.mxu1 %v2283_v23 }
 0x485   : > { %v2289_v14 = vpop.permute.xlu1 %2288 }
 0x4c0   : > { %v2262_v29 = vpop.f32.mrb[0].mxu1 }
 0x4c1   : > { %v2268_v26 = vpack.c.bf16 %v2262_v29, %v2262_v29  ;;  %v2452_v44 = vpop.f32.mrb[1].mxu1 }
 0x4c2   : > { %v2265_v12 = vpop.f32.mrb[2].mxu1 }
 0x4c3   : > { %v2453_v17 = vpop.f32.mrb[3].mxu1  ;;  %2324 = vmatmul.mubr.bf16.vlgmr.msra.gmra.mrb[4].mxu1 %v2268_v26 }
 0x596   : > { %v2325_v0 = vpop.f32.mrb[4].mxu1 }
 0x597   : > { %v2326_v63 = vadd.f32 %v2325_v0, %v2289_v14  ;;  %v2327_v36 = vpop.f32.mrb[5].mxu1 }
 0x598   : > { %v2328_v50 = vadd.f32 %v2327_v36, %v2289_v14  ;;  %v2329_v49 = vpop.f32.mrb[6].mxu1 }
 0x599   : > { %v2330_v31 = vpop.f32.mrb[7].mxu1 }
 0x59a   : > { %v2334_v42 = vcombine.low %v2326_v63, %v2328_v50 }
 0x59c   : > { %2336 = vst [vmem:[%s217_s17] sm:$0xff] %v2334_v42 }
 0x59d   : > { %2689 = shalt.err (!%p2686_p3)
}
 0x59e   : > { %s2690_s10 = scalar_lea.hbm %s4664_s30, 128  ;;  %s2694_s13 = scalar_lea.hbm %s4711_s5, 256 }
 0x59f   : > { %p2691_p4 = scmp.ne.s32.totalorder %s4664_s30, %s2690_s10  ;;  %p2695_p9 = scmp.lt.u32.totalorder %s4664_s30, %s4711_s5 }
 0x5a0   : > { %p2696_p10 = scmp.lt.u32.totalorder %s2694_s13, %s2690_s10  ;;  %p2698_p12 = scmp.lt.u32.totalorder %s2690_s10, %s4664_s30 }
 0x5a1   : > { %p2692_p7 = pnand %p2691_p4, %p2815_p5 }
 0x5a2   : > { %p2697_p11 = por %p2696_p10, %p2695_p9 }
 0x5a3   : > { %p2693_p8 = pneg %p2692_p7 }
 0x5a4   : > { %p2699_p13 = por %p2698_p12, %p2697_p11 }
 0x5a6   : > { %p2700_p0 = pnand %p2699_p13, %p2693_p8 }
 0x5a8   : > { %2703 = shalt.err (!%p2700_p0)
}
 0x5a9   : > { %2454 = dma.vmem_to_hbm [thread:$0]  (%p2815_p5), %s4666_s23, 128, %s4664_s30, %s2338_s6  }
 0x5aa PF: > { %p2460_p1 = scmp.ge.s32.totalorder %s2738_s21, 2  ;;  %s2364_s16 = sand.u32 1, %s2726_s18  }
 0x5ab   : > { %s2365_s17 = scalar_lea.sflag [#allocation3], %s2364_s16 }
 0x5ac   : > { %p2457_p2 = pnand %p2460_p1, %p2819_p6 }
 0x5ae   : > { %2721 = dma.done.wait (!%p2457_p2), %s2365_s17, 128  }
 0x5af   : > { %2723 = vsyncadd (!%p2457_p2), %s2365_s17, 4294967168  ;;  %p15_p3 = scmp.ge.s32.totalorder %s2802_s24, 4   ;;  %s5030_s18 = smov %s2730_s19 }
 0x5b0   : > { %s5031_s19 = smov %s2734_s20  ;;  %s5032_s20 = smov %s2813_s27 }
 0x5b1   : > { %s5033_s21 = smov %s2802_s24  ;;  %17 = sbr.rel (!%p15_p3) target bundleno = 3 (0x3), region = 75 }
 0x5b8   :  { %2370 = vsyncpa [#allocation3], 1 }
 0x5b9   :  { %2372 = vsyncpa [#allocation3 + $0x1], 1 }

</bundles_post_ra>
